<compile_context>
chip_gen: v5e
topology: v5e:2x2
jax: 0.10.0
libtpu: 0.0.40
codegen_flags: <defaults>
</compile_context>

<pallas_src>
import functools

import jax
import jax.numpy as jnp
import numpy as np
from jax.experimental import pallas as pl
from jax.experimental.pallas import tpu as pltpu

OMEGA_0 = 30.0


def _round_up(x, m):
    return (x + m - 1) // m * m


def _resblock_kernel_proj(x_ref, w1t_ref, b1t_ref, w2_ref, b2_ref, o_ref, *, out_p):
    """in_features != out_features: fused [w1 | wt] matmul + sine branch."""
    x = x_ref[...]
    # One MXU pass for both x-sharing matmuls (net[0] linear and transform linear).
    z = jnp.dot(x, w1t_ref[...], preferred_element_type=jnp.float32) + b1t_ref[...]
    z = jnp.maximum(z, 0.0)                       # ReLU on both branches
    h1 = z[:, :out_p]                             # net[0] output (static lane slice)
    skip = z[:, out_p:]                           # transform output
    # SineLayer: omega_0 already folded into w2/b2 in the wrapper.
    h2 = jnp.sin(jnp.dot(h1, w2_ref[...], preferred_element_type=jnp.float32)
                 + b2_ref[...])
    h2 = jnp.maximum(h2, 0.0)
    o_ref[...] = 0.5 * (h2 + skip)


def _resblock_kernel_id(x_ref, w1_ref, b1_ref, w2_ref, b2_ref, o_ref):
    """in_features == out_features: identity skip."""
    x = x_ref[...]
    h1 = jnp.maximum(
        jnp.dot(x, w1_ref[...], preferred_element_type=jnp.float32) + b1_ref[...], 0.0)
    h2 = jnp.maximum(
        jnp.sin(jnp.dot(h1, w2_ref[...], preferred_element_type=jnp.float32)
                + b2_ref[...]), 0.0)
    o_ref[...] = 0.5 * (h2 + x)


def _vmem_cap_bytes():
    """Device-derived scoped-VMEM cap with headroom (v7x has only 64 MiB)."""
    try:
        cap = int(pltpu.get_tpu_info().vmem_capacity_bytes)
    except Exception:  # pragma: no cover - conservative fallback
        cap = 64 << 20
    return max(32 << 20, min(cap - (16 << 20), 100 << 20))


def resblock_relu(x, params, *, row_tile=512):
    """ResBlockReLU forward. x: [N, in_features] f32; params from init_params."""
    N, in_f = x.shape
    out_f = params["w1"].shape[1]
    flag = in_f != out_f
    x = x.astype(jnp.float32)

    # Lane-dense output/weight columns. Zero padding is exact: zero weight
    # rows/cols contribute 0, sin(0)=0, relu(0)=0, padded lanes sliced off.
    out_p = _round_up(out_f, 128)
    # x feature dim: never padded in the projection case (a full-last-dim block
    # is legal, avoids 8x HBM read amplification for tiny in_f). Identity case
    # needs x and out on the same lane layout for the skip add.
    x_f = in_f if flag else out_p

    # Fold omega_0 into the SineLayer weights once, wrapper-side.
    w2 = jnp.pad((OMEGA_0 * params["w2"]).astype(jnp.float32),
                 ((0, out_p - out_f), (0, out_p - out_f)))
    b2 = jnp.pad((OMEGA_0 * params["b2"]).astype(jnp.float32),
                 (0, out_p - out_f)).reshape(1, out_p)
    w1 = jnp.pad(params["w1"].astype(jnp.float32),
                 ((0, x_f - in_f), (0, out_p - out_f)))
    b1 = jnp.pad(params["b1"].astype(jnp.float32),
                 (0, out_p - out_f)).reshape(1, out_p)

    if flag:
        wt = jnp.pad(params["wt"].astype(jnp.float32),
                     ((0, 0), (0, out_p - out_f)))
        bt = jnp.pad(params["bt"].astype(jnp.float32),
                     (0, out_p - out_f)).reshape(1, out_p)
        w1t = jnp.concatenate([w1, wt], axis=1)      # [x_f, 2*out_p]
        b1t = jnp.concatenate([b1, bt], axis=1)      # [1, 2*out_p]
        w_args = (w1t, b1t, w2, b2)
        w_shapes = [(x_f, 2 * out_p), (1, 2 * out_p), (out_p, out_p), (1, out_p)]
        kernel = functools.partial(_resblock_kernel_proj, out_p=out_p)
        n_temps = 6          # z (2*out_p wide) + h1/h2/skip + slack
    else:
        w_args = (w1, b1, w2, b2)
        w_shapes = [(x_f, out_p), (1, out_p), (out_p, out_p), (1, out_p)]
        kernel = _resblock_kernel_id
        n_temps = 5          # h1/h2 + slack
    w_elems = sum(a * b for a, b in w_shapes)

    # Row tile: large (amortizes ~0.35us/step pipeline overhead), multiple of 8.
    # Split into >=2 grid steps when possible so both v7x TensorCores get work.
    rt = min(_round_up(row_tile, 8), _round_up(N, 8))
    if N >= 16:
        rt = min(rt, max(8, _round_up((N + 1) // 2, 8)))
    rt = max(8, rt)

    # VMEM footprint: double-buffered x/out tiles + single-buffered resident
    # weights + kernel-internal temporaries (z/h1/h2/skip). Shrink the row tile
    # if it would exceed the device's scoped-VMEM cap.
    def vmem_need(rt_):
        act = 2 * rt_ * x_f + 2 * rt_ * out_p
        temps = n_temps * rt_ * out_p
        return 4 * (act + temps + w_elems) + (1 << 20)

    cap = _vmem_cap_bytes()
    while rt > 8 and vmem_need(rt) > cap:
        rt = max(8, _round_up(rt // 2, 8))

    n_pad = _round_up(N, rt)
    grid = n_pad // rt

    # Only materialize a padded copy of x when actually required.
    if n_pad != N or x_f != in_f:
        xp = jnp.pad(x, ((0, n_pad - N), (0, x_f - in_f)))
    else:
        xp = x

    mm_flops = 2 * n_pad * (x_f * (2 * out_p if flag else out_p) + out_p * out_p)

    compiler_kwargs = dict(dimension_semantics=("parallel",))
    need = vmem_need(rt)
    if need > (30 << 20):
        compiler_kwargs["vmem_limit_bytes"] = int(min(need, cap))

    def _call(single_buffer_weights):
        if single_buffer_weights:
            # Constant-index weight blocks are DMA'd once; single-buffer them
            # so the saved VMEM can fund larger row tiles.
            full = lambda shape: pl.BlockSpec(shape, lambda i: (0, 0),
                                              pipeline_mode=pl.Buffered(1))
        else:
            full = lambda shape: pl.BlockSpec(shape, lambda i: (0, 0))
        row_spec_in = pl.BlockSpec((rt, x_f), lambda i: (i, 0))
        row_spec_out = pl.BlockSpec((rt, out_p), lambda i: (i, 0))
        in_specs = [row_spec_in] + [full(s) for s in w_shapes]
        return pl.pallas_call(
            kernel,
            out_shape=jax.ShapeDtypeStruct((n_pad, out_p), jnp.float32),
            grid_spec=pltpu.PrefetchScalarGridSpec(
                num_scalar_prefetch=0,
                grid=(grid,),
                in_specs=in_specs,
                out_specs=row_spec_out),
            compiler_params=pltpu.CompilerParams(**compiler_kwargs),
            cost_estimate=pl.CostEstimate(
                flops=int(mm_flops),
                transcendentals=int(n_pad * out_p),
                bytes_accessed=int(4 * (n_pad * x_f + n_pad * out_p + w_elems))),
        )(xp, *w_args)

    try:
        out = _call(True)
    except Exception:
        # Fallback in case this JAX build rejects Buffered(1) on pallas_call specs.
        out = _call(False)

    if n_pad != N or out_p != out_f:
        out = out[:N, :out_f]
    return out


def init_params(key, in_features, out_features):
    """Deterministic init mirroring the PyTorch module's distributions."""
    k = jax.random.split(key, 6)
    # LinearLayer(in, out): weight ~ U(-1/in, 1/in); bias keeps nn.Linear default
    # U(-1/sqrt(in), 1/sqrt(in)). Stored transposed: [in, out].
    w1 = jax.random.uniform(k[0], (in_features, out_features),
                            minval=-1.0 / in_features, maxval=1.0 / in_features)
    b1 = jax.random.uniform(k[1], (out_features,),
                            minval=-1.0 / np.sqrt(in_features),
                            maxval=1.0 / np.sqrt(in_features))
    # SineLayer(out, out), is_first=False: weight ~ U(-sqrt(6/out)/w0, sqrt(6/out)/w0)
    bnd = np.sqrt(6.0 / out_features) / OMEGA_0
    w2 = jax.random.uniform(k[2], (out_features, out_features), minval=-bnd, maxval=bnd)
    b2 = jax.random.uniform(k[3], (out_features,),
                            minval=-1.0 / np.sqrt(out_features),
                            maxval=1.0 / np.sqrt(out_features))
    params = {"w1": w1.astype(jnp.float32), "b1": b1.astype(jnp.float32),
              "w2": w2.astype(jnp.float32), "b2": b2.astype(jnp.float32)}
    if in_features != out_features:
        wt = jax.random.uniform(k[4], (in_features, out_features),
                                minval=-1.0 / in_features, maxval=1.0 / in_features)
        bt = jax.random.uniform(k[5], (out_features,),
                                minval=-1.0 / np.sqrt(in_features),
                                maxval=1.0 / np.sqrt(in_features))
        params["wt"] = wt.astype(jnp.float32)
        params["bt"] = bt.astype(jnp.float32)
    return params


def resblock_relu_ref(x, params):
    h = jnp.maximum(x @ params["w1"] + params["b1"], 0.0)
    h = jnp.maximum(jnp.sin(OMEGA_0 * (h @ params["w2"] + params["b2"])), 0.0)
    if "wt" in params:
        skip = jnp.maximum(x @ params["wt"] + params["bt"], 0.0)
    else:
        skip = x
    return 0.5 * (h + skip)


if __name__ == "__main__":
    key = jax.random.PRNGKey(0)
    k_x, k_p, k_x2, k_p2 = jax.random.split(key, 4)

    # Projection branch: in_features != out_features.
    N, IN_F, OUT_F = 64, 16, 32
    x = jax.random.normal(k_x, (N, IN_F), dtype=jnp.float32)
    params = init_params(k_p, IN_F, OUT_F)
    out = jax.block_until_ready(resblock_relu(x, params))
    ref = resblock_relu_ref(x, params)
    np.testing.assert_allclose(np.asarray(out), np.asarray(ref), rtol=1e-5, atol=1e-5)

    # Identity-skip branch: in_features == out_features.
    N2, F2 = 64, 32
    x2 = jax.random.normal(k_x2, (N2, F2), dtype=jnp.float32)
    params2 = init_params(k_p2, F2, F2)
    out2 = jax.block_until_ready(resblock_relu(x2, params2))
    ref2 = resblock_relu_ref(x2, params2)
    np.testing.assert_allclose(np.asarray(out2), np.asarray(ref2), rtol=1e-5, atol=1e-5)

    print("KERNEL_OK")
</pallas_src>

<mosaic_0001>
module attributes {stable_mosaic.version = 11 : i64} {
  func.func @_resblock_kernel_proj(%arg0: i32, %arg1: memref<32x16xf32, #tpu.memory_space<vmem>>, %arg2: memref<16x256xf32, #tpu.memory_space<vmem>>, %arg3: memref<1x256xf32, #tpu.memory_space<vmem>>, %arg4: memref<128x128xf32, #tpu.memory_space<vmem>>, %arg5: memref<1x128xf32, #tpu.memory_space<vmem>>, %arg6: memref<32x128xf32, #tpu.memory_space<vmem>>) attributes {dimension_semantics = [#tpu.dimension_semantics<parallel>], iteration_bounds = array<i64: 2>, scalar_prefetch = 0 : i64, scratch_operands = 0 : i64, tpu.core_type = #tpu.core_type<tc>, window_params = [{transform_indices = @transform_0, window_bounds = array<i64: 32, 16>}, {pipeline_mode = #tpu.pipeline_mode<synchronous>, transform_indices = @transform_1, window_bounds = array<i64: 16, 256>}, {pipeline_mode = #tpu.pipeline_mode<synchronous>, transform_indices = @transform_2, window_bounds = array<i64: 1, 256>}, {pipeline_mode = #tpu.pipeline_mode<synchronous>, transform_indices = @transform_3, window_bounds = array<i64: 128, 128>}, {pipeline_mode = #tpu.pipeline_mode<synchronous>, transform_indices = @transform_4, window_bounds = array<i64: 1, 128>}, {transform_indices = @transform_5, window_bounds = array<i64: 32, 128>}]} {
    %c0 = arith.constant 0 : index
    %c0_0 = arith.constant 0 : index
    %0 = vector.load %arg1[%c0, %c0_0] : memref<32x16xf32, #tpu.memory_space<vmem>>, vector<32x16xf32>
    %c0_1 = arith.constant 0 : index
    %c0_2 = arith.constant 0 : index
    %1 = vector.load %arg2[%c0_1, %c0_2] : memref<16x256xf32, #tpu.memory_space<vmem>>, vector<16x256xf32>
    %cst = arith.constant dense<0.000000e+00> : vector<32x256xf32>
    %2 = tpu.matmul %0, %1, %cst {dimension_numbers = #tpu.dot_dimension_numbers<[1], [0], [0], [1], [0, 0, 1, 1], [], []>} : vector<32x16xf32>, vector<16x256xf32>, vector<32x256xf32> -> vector<32x256xf32>
    %c0_3 = arith.constant 0 : index
    %c0_4 = arith.constant 0 : index
    %3 = vector.load %arg3[%c0_3, %c0_4] : memref<1x256xf32, #tpu.memory_space<vmem>>, vector<1x256xf32>
    %4 = vector.broadcast %3 : vector<1x256xf32> to vector<32x256xf32>
    %5 = arith.addf %2, %4 : vector<32x256xf32>
    %cst_5 = arith.constant 0.000000e+00 : f32
    %6 = vector.broadcast %cst_5 : f32 to vector<32x256xf32>
    %7 = arith.maximumf %5, %6 : vector<32x256xf32>
    %8 = vector.extract_strided_slice %7 {offsets = [0, 0], sizes = [32, 128], strides = [1, 1]} : vector<32x256xf32> to vector<32x128xf32>
    %9 = vector.extract_strided_slice %7 {offsets = [0, 128], sizes = [32, 128], strides = [1, 1]} : vector<32x256xf32> to vector<32x128xf32>
    %c0_6 = arith.constant 0 : index
    %c0_7 = arith.constant 0 : index
    %10 = vector.load %arg4[%c0_6, %c0_7] : memref<128x128xf32, #tpu.memory_space<vmem>>, vector<128x128xf32>
    %cst_8 = arith.constant dense<0.000000e+00> : vector<32x128xf32>
    %11 = tpu.matmul %8, %10, %cst_8 {dimension_numbers = #tpu.dot_dimension_numbers<[1], [0], [0], [1], [0, 0, 1, 1], [], []>} : vector<32x128xf32>, vector<128x128xf32>, vector<32x128xf32> -> vector<32x128xf32>
    %c0_9 = arith.constant 0 : index
    %c0_10 = arith.constant 0 : index
    %12 = vector.load %arg5[%c0_9, %c0_10] : memref<1x128xf32, #tpu.memory_space<vmem>>, vector<1x128xf32>
    %13 = vector.broadcast %12 : vector<1x128xf32> to vector<32x128xf32>
    %14 = arith.addf %11, %13 : vector<32x128xf32>
    %15 = math.sin %14 : vector<32x128xf32>
    %cst_11 = arith.constant 0.000000e+00 : f32
    %16 = vector.broadcast %cst_11 : f32 to vector<32x128xf32>
    %17 = arith.maximumf %15, %16 : vector<32x128xf32>
    %18 = arith.addf %17, %9 : vector<32x128xf32>
    %cst_12 = arith.constant 5.000000e-01 : f32
    %19 = vector.broadcast %cst_12 : f32 to vector<32x128xf32>
    %20 = arith.mulf %19, %18 : vector<32x128xf32>
    %c0_13 = arith.constant 0 : index
    %c0_14 = arith.constant 0 : index
    %21 = vector.load %arg6[%c0_13, %c0_14] : memref<32x128xf32, #tpu.memory_space<vmem>>, vector<32x128xf32>
    tpu.vector_store %arg6[%c0_13, %c0_14], %20 {strides = array<i32>} : memref<32x128xf32, #tpu.memory_space<vmem>>, vector<32x128xf32>,
    return
  }
  func.func @transform_0(%arg0: i32) -> (i32, i32) {
    %c0_i32 = arith.constant 0 : i32
    %c0_i32_0 = arith.constant 0 : i32
    return %arg0, %c0_i32 : i32, i32
  }
  func.func @transform_1(%arg0: i32) -> (i32, i32) {
    %c0_i32 = arith.constant 0 : i32
    %c0_i32_0 = arith.constant 0 : i32
    %c0_i32_1 = arith.constant 0 : i32
    return %c0_i32, %c0_i32_0 : i32, i32
  }
  func.func @transform_2(%arg0: i32) -> (i32, i32) {
    %c0_i32 = arith.constant 0 : i32
    %c0_i32_0 = arith.constant 0 : i32
    %c0_i32_1 = arith.constant 0 : i32
    return %c0_i32, %c0_i32_0 : i32, i32
  }
  func.func @transform_3(%arg0: i32) -> (i32, i32) {
    %c0_i32 = arith.constant 0 : i32
    %c0_i32_0 = arith.constant 0 : i32
    %c0_i32_1 = arith.constant 0 : i32
    return %c0_i32, %c0_i32_0 : i32, i32
  }
  func.func @transform_4(%arg0: i32) -> (i32, i32) {
    %c0_i32 = arith.constant 0 : i32
    %c0_i32_0 = arith.constant 0 : i32
    %c0_i32_1 = arith.constant 0 : i32
    return %c0_i32, %c0_i32_0 : i32, i32
  }
  func.func @transform_5(%arg0: i32) -> (i32, i32) {
    %c0_i32 = arith.constant 0 : i32
    %c0_i32_0 = arith.constant 0 : i32
    return %arg0, %c0_i32 : i32, i32
  }
}

module attributes {stable_mosaic.version = 11 : i64} {
  func.func @_resblock_kernel_proj(%arg0: i32, %arg1: memref<32x16xf32, #tpu.memory_space<vmem>>, %arg2: memref<16x256xf32, #tpu.memory_space<vmem>>, %arg3: memref<1x256xf32, #tpu.memory_space<vmem>>, %arg4: memref<128x128xf32, #tpu.memory_space<vmem>>, %arg5: memref<1x128xf32, #tpu.memory_space<vmem>>, %arg6: memref<32x128xf32, #tpu.memory_space<vmem>>) attributes {dimension_semantics = [#tpu.dimension_semantics<parallel>], iteration_bounds = array<i64: 2>, scalar_prefetch = 0 : i64, scratch_operands = 0 : i64, tpu.core_type = #tpu.core_type<tc>, window_params = [{transform_indices = @transform_0, window_bounds = array<i64: 32, 16>}, {pipeline_mode = #tpu.pipeline_mode<synchronous>, transform_indices = @transform_1, window_bounds = array<i64: 16, 256>}, {pipeline_mode = #tpu.pipeline_mode<synchronous>, transform_indices = @transform_2, window_bounds = array<i64: 1, 256>}, {pipeline_mode = #tpu.pipeline_mode<synchronous>, transform_indices = @transform_3, window_bounds = array<i64: 128, 128>}, {pipeline_mode = #tpu.pipeline_mode<synchronous>, transform_indices = @transform_4, window_bounds = array<i64: 1, 128>}, {transform_indices = @transform_5, window_bounds = array<i64: 32, 128>}]} {
    %c0 = arith.constant 0 : index
    %c0_0 = arith.constant 0 : index
    %0 = vector.load %arg1[%c0, %c0_0] : memref<32x16xf32, #tpu.memory_space<vmem>>, vector<32x16xf32>
    %c0_1 = arith.constant 0 : index
    %c0_2 = arith.constant 0 : index
    %1 = vector.load %arg2[%c0_1, %c0_2] : memref<16x256xf32, #tpu.memory_space<vmem>>, vector<16x256xf32>
    %cst = arith.constant dense<0.000000e+00> : vector<32x256xf32>
    %2 = tpu.matmul %0, %1, %cst {dimension_numbers = #tpu.dot_dimension_numbers<[1], [0], [0], [1], [0, 0, 1, 1], [], []>} : vector<32x16xf32>, vector<16x256xf32>, vector<32x256xf32> -> vector<32x256xf32>
    %c0_3 = arith.constant 0 : index
    %c0_4 = arith.constant 0 : index
    %3 = vector.load %arg3[%c0_3, %c0_4] : memref<1x256xf32, #tpu.memory_space<vmem>>, vector<1x256xf32>
    %4 = vector.broadcast %3 : vector<1x256xf32> to vector<32x256xf32>
    %5 = arith.addf %2, %4 : vector<32x256xf32>
    %cst_5 = arith.constant 0.000000e+00 : f32
    %6 = vector.broadcast %cst_5 : f32 to vector<32x256xf32>
    %7 = arith.maximumf %5, %6 : vector<32x256xf32>
    %8 = vector.extract_strided_slice %7 {offsets = [0, 0], sizes = [32, 128], strides = [1, 1]} : vector<32x256xf32> to vector<32x128xf32>
    %9 = vector.extract_strided_slice %7 {offsets = [0, 128], sizes = [32, 128], strides = [1, 1]} : vector<32x256xf32> to vector<32x128xf32>
    %c0_6 = arith.constant 0 : index
    %c0_7 = arith.constant 0 : index
    %10 = vector.load %arg4[%c0_6, %c0_7] : memref<128x128xf32, #tpu.memory_space<vmem>>, vector<128x128xf32>
    %cst_8 = arith.constant dense<0.000000e+00> : vector<32x128xf32>
    %11 = tpu.matmul %8, %10, %cst_8 {dimension_numbers = #tpu.dot_dimension_numbers<[1], [0], [0], [1], [0, 0, 1, 1], [], []>} : vector<32x128xf32>, vector<128x128xf32>, vector<32x128xf32> -> vector<32x128xf32>
    %c0_9 = arith.constant 0 : index
    %c0_10 = arith.constant 0 : index
    %12 = vector.load %arg5[%c0_9, %c0_10] : memref<1x128xf32, #tpu.memory_space<vmem>>, vector<1x128xf32>
    %13 = vector.broadcast %12 : vector<1x128xf32> to vector<32x128xf32>
    %14 = arith.addf %11, %13 : vector<32x128xf32>
    %15 = math.sin %14 : vector<32x128xf32>
    %cst_11 = arith.constant 0.000000e+00 : f32
    %16 = vector.broadcast %cst_11 : f32 to vector<32x128xf32>
    %17 = arith.maximumf %15, %16 : vector<32x128xf32>
    %18 = arith.addf %17, %9 : vector<32x128xf32>
    %cst_12 = arith.constant 5.000000e-01 : f32
    %19 = vector.broadcast %cst_12 : f32 to vector<32x128xf32>
    %20 = arith.mulf %19, %18 : vector<32x128xf32>
    %c0_13 = arith.constant 0 : index
    %c0_14 = arith.constant 0 : index
    %21 = vector.load %arg6[%c0_13, %c0_14] : memref<32x128xf32, #tpu.memory_space<vmem>>, vector<32x128xf32>
    tpu.vector_store %arg6[%c0_13, %c0_14], %20 {strides = array<i32>} : memref<32x128xf32, #tpu.memory_space<vmem>>, vector<32x128xf32>,
    return
  }
  func.func @transform_0(%arg0: i32) -> (i32, i32) {
    %c0_i32 = arith.constant 0 : i32
    %c0_i32_0 = arith.constant 0 : i32
    return %arg0, %c0_i32 : i32, i32
  }
  func.func @transform_1(%arg0: i32) -> (i32, i32) {
    %c0_i32 = arith.constant 0 : i32
    %c0_i32_0 = arith.constant 0 : i32
    %c0_i32_1 = arith.constant 0 : i32
    return %c0_i32, %c0_i32_0 : i32, i32
  }
  func.func @transform_2(%arg0: i32) -> (i32, i32) {
    %c0_i32 = arith.constant 0 : i32
    %c0_i32_0 = arith.constant 0 : i32
    %c0_i32_1 = arith.constant 0 : i32
    return %c0_i32, %c0_i32_0 : i32, i32
  }
  func.func @transform_3(%arg0: i32) -> (i32, i32) {
    %c0_i32 = arith.constant 0 : i32
    %c0_i32_0 = arith.constant 0 : i32
    %c0_i32_1 = arith.constant 0 : i32
    return %c0_i32, %c0_i32_0 : i32, i32
  }
  func.func @transform_4(%arg0: i32) -> (i32, i32) {
    %c0_i32 = arith.constant 0 : i32
    %c0_i32_0 = arith.constant 0 : i32
    %c0_i32_1 = arith.constant 0 : i32
    return %c0_i32, %c0_i32_0 : i32, i32
  }
  func.func @transform_5(%arg0: i32) -> (i32, i32) {
    %c0_i32 = arith.constant 0 : i32
    %c0_i32_0 = arith.constant 0 : i32
    return %arg0, %c0_i32 : i32, i32
  }
}

</mosaic_0001>

<bundles_post_ra>
// kernel: tpu_custom_call.1
= control target key start
LH: loop header
LB: loop body
LE: loop exit
PB: predicated region body
PF: predicated region fallthrough
CT: control target
= control target key end

     0   :  { %10 = vsyncpa [#allocation3], 0  ;;  %s1966_s0 = inlined_call_operand.vmem [shape: f32[64,16], index: 0, kind: input, shape index: {}]   ;;  %s1967_s1 = inlined_call_operand.vmem [shape: f32[16,256], index: 1, kind: input, shape index: {}]   ;;  %s1968_s2 = inlined_call_operand.vmem [shape: f32[1,256], index: 2, kind: input, shape index: {}]   ;;  %s1969_s3 = inlined_call_operand.hbm [shape: f32[128,128], index: 3, kind: input, shape index: {}]   ;;  %s1970_s4 = inlined_call_operand.vmem [shape: f32[1,128], index: 4, kind: input, shape index: {}]   ;;  %s1971_s5 = inlined_call_operand.hbm [shape: f32[64,128], index: 5, kind: output, shape index: {}]  }
   0x1   :  { %11 = vsyncpa [#allocation4], 0 }
   0x2   :  { %13 = vsyncpa [#allocation4 + $0x1], 0  ;;  %s1396_s18 = smov 0   ;;  %s1398_s19 = smov 0  }
   0x3   :  { %s1400_s20 = smov 0   ;;  %s1402_s21 = smov 0  }
   0x4 LB: > { %s1417_s22 = sadd.s32 4294967295, %s1352_s21   ;;  %s1111_s23 = sadd.s32 4294967294, %s1352_s21   ;;  %s1352_s21 = sphi %s1402_s21, %s1983_s21   ;;  %s1348_s20 = sphi %s1400_s20, %s1982_s20   ;;  %s1344_s19 = sphi %s1398_s19, %s1981_s19   ;;  %s1340_s18 = sphi %s1396_s18, %s1980_s18  }
   0x5   : > { %s1421_s24 = sadd.s32 1, %s1352_s21   ;;  %s136_s25 = sadd.s32 1, %s1348_s20 }
   0x6   : > { %s133_s26 = ssub.s32 %s1352_s21, %s1421_s24  ;;  %p146_p0 = scmp.ne.s32.totalorder %s1348_s20, %s1344_s19 }
   0x7   : > { %p134_p1 = scmp.eq.s32.totalorder %s133_s26, 0  ;;  %p147_p2 = scmp.eq.s32.totalorder %s1417_s22, 1 }
   0x8   : > { %p152_p3 = scmp.ne.s32.totalorder %s1344_s19, %s1340_s18  ;;  %p153_p4 = scmp.eq.s32.totalorder %s1111_s23, 1 }
   0x9   : > { %s1432_s27 = scalar_select %p134_p1, %s1348_s20, %s136_s25  }
   0xa   : > { %p1434_p5 = por %p147_p2, %p146_p0  ;;  %p1438_p6 = por %p153_p4, %p152_p3 }
   0xb   : > { %p1112_p7 = scmp.ge.s32.totalorder %s1352_s21, 1  ;;  %p160_p8 = scmp.lt.s32.totalorder %s1352_s21, 3 }
   0xc   : > { %p1208_p9 = scmp.eq.s32.totalorder %s1417_s22, 0  ;;  %s177_s7 = sshll.u32 %s1969_s3, 4  ;;  %s178_s7 = int_to_ptr.hbm [resolvable:$true] %s177_s7 }
   0xd   : > { %p161_p10 = pnand %p1112_p7, %p160_p8  ;;  %s1354_s8 = smov [#allocation2]  }
   0xe   : > { %s179_s9 = sshll.u32 %s1354_s8, 4  ;;  %s1355_s10 = smov 128   ;;  %s180_s9 = int_to_ptr.vmem [resolvable:$true] %s179_s9 }
   0xf   : > { %p1200_p11 = pneg %p161_p10  ;;  %s1356_s11 = smov 8  }
  0x10   : > { %207 = sbr.rel (%p161_p10) target bundleno = 494 (0x1ee), region = 40 }
  0x11   : > { %p1201_p12 = pnand %p1208_p9, %p1200_p11 }
  0x13   : > { %1203 = dma.hbm_to_vmem [thread:$0]  (!%p1201_p12), %s178_s7, 2048, %s180_s9, [#allocation3], %s1355_s10, %s1355_s10, %s1356_s11  }
  0x15   : > { %1331 = dma.done.wait (%p1208_p9), [#allocation3], 2048  }
  0x16   : > { %1333 = vsyncadd (%p1208_p9), [#allocation3], 4294965248  ;;  %s1118_s12 = sshll.u32 %s1417_s22, 2  ;;  %v249_v0 = vld [vmem:[%s1967_s1 + $0x10] sm:$0xff]  ;;  %v247_v1 = vld [vmem:[%s1967_s1] sm:$0xff]  ;;  %vm257_vm0 = vcmask 130048  }
  0x17   : > { %p237_p13 = scmp.lt.s32.totalorder %s1118_s12, 7  ;;  %284 = vmatpush.msra.mxu0 %v249_v0  ;;  %v351_v3 = vld [vmem:[#allocation2 + $0x78] sm:$0xff]  ;;  %v248_v5 = vld [vmem:[%s1967_s1 + $0x8] sm:$0xff]  ;;  %v350_v6 = vld [vmem:[#allocation2 + $0x70] sm:$0xff]  ;;  %s1306_s10 = scalar_lea.hbm %s1971_s5, 64 }
  0x18   : > { %v250_v4 = vld [vmem:[%s1967_s1 + $0x18] sm:$0xff]  ;;  %1147 = vmatpush.msra.mxu2 %v351_v3  ;;  %v349_v7 = vld [vmem:[#allocation2 + $0x68] sm:$0xff]  ;;  %v348_v8 = vld [vmem:[#allocation2 + $0x60] sm:$0xff]  ;;  %1148 = vmatpush.msra.mxu3 %v351_v3 }
  0x19   : > { %s1985_s12 = smov (!%p237_p13, %s1118_s12), 7  ;;  %285 = vmatpush.msra.mxu0 %v247_v1  ;;  %313 = vmatpush.msra.mxu1 %v250_v4  ;;  %v347_v10 = vld [vmem:[#allocation2 + $0x58] sm:$0xff]  ;;  %v346_v11 = vld [vmem:[#allocation2 + $0x50] sm:$0xff]  ;;  %v345_v12 = vld [vmem:[#allocation2 + $0x48] sm:$0xff]  ;;  %v1358_v4 = vmov 2475754826  }
  0x1a   : > { %s1119_s13 = sshll.u32 %s1985_s12, 3  ;;  %1150 = vmatpush.msra.mxu2 %v350_v6  ;;  %1151 = vmatpush.msra.mxu3 %v350_v6  ;;  %v344_v13 = vld [vmem:[#allocation2 + $0x40] sm:$0xff]  ;;  %v343_v15 = vld [vmem:[#allocation2 + $0x38] sm:$0xff]  ;;  %v342_v16 = vld [vmem:[#allocation2 + $0x30] sm:$0xff] }
  0x1b   : > { %s1458_s16 = scalar_lea.vmem %s1966_s0, %s1119_s13  ;;  %356 = vmatpush.msrb.mxu0 %v351_v3  ;;  %314 = vmatpush.msra.mxu1 %v248_v5  ;;  %v341_v17 = vld [vmem:[#allocation2 + $0x28] sm:$0xff]  ;;  %v340_v18 = vld [vmem:[#allocation2 + $0x20] sm:$0xff]  ;;  %v339_v20 = vld [vmem:[#allocation2 + $0x18] sm:$0xff]  ;;  %s233_s13 = sand.u32 1, %s1344_s19  }
  0x1c   : > { %v243_v2 = vld [vmem:[%s1458_s16] sm:$0xff]  ;;  %1153 = vmatpush.msra.mxu2 %v349_v7  ;;  %v244_v9 = vld [vmem:[%s1458_s16 + $0x8] sm:$0xff]  ;;  %1154 = vmatpush.msra.mxu3 %v349_v7  ;;  %v245_v14 = vld [vmem:[%s1458_s16 + $0x10] sm:$0xff]  ;;  %s1117_s14 = sshll.u32 %s233_s13, 5  ;;  %s1022_s30 = scalar_lea.sflag [#allocation4], %s233_s13 }
  0x1d   : > { %1120 = vmatmul.msk.f32.vlgmr.msra.gmra.mxu0 %vm257_vm0, %v243_v2  ;;  %1124 = vmatmul.msk.f32.vlgmr.msra.gmra.mxu1 %vm257_vm0, %v243_v2  ;;  %v246_v19 = vld [vmem:[%s1458_s16 + $0x18] sm:$0xff]  ;;  %v338_v21 = vld [vmem:[#allocation2 + $0x10] sm:$0xff]  ;;  %v337_v22 = vld [vmem:[#allocation2 + $0x8] sm:$0xff]  ;;  %v1357_v2 = vmov 683565275   ;;  %s1809_s15 = scalar_lea.vmem [#allocation5], %s1117_s14 }
  0x1e   : > { %357 = vmatpush.msrb.mxu0 %v350_v6  ;;  %1146 = vmatpush.msrb.mxu1 %v351_v3  ;;  %v336_v23 = vld [vmem:[#allocation2] sm:$0xff]  ;;  %s1145_s16 = sshll.u32 %s1417_s22, 5  ;;  %s1034_s22 = sshll.u32 %s1809_s15, 4  ;;  %s1035_s22 = int_to_ptr.vmem [resolvable:$true] %s1034_s22 }
  0x1f   : > { %1156 = vmatpush.msra.mxu2 %v348_v8  ;;  %1157 = vmatpush.msra.mxu3 %v348_v8  ;;  %v251_v24 = vld [vmem:[%s1968_s2] sm:$0x3]  ;;  %s1033_s25 = scalar_lea.hbm %s1971_s5, %s1145_s16 }
  0x20   : > { %358 = vmatpush.msrb.mxu0 %v349_v7  ;;  %1149 = vmatpush.msrb.mxu1 %v350_v6  ;;  %v253_v25 = vperm.slane %v251_v24, 0  ;;  %v1491_v36 = vperm.slane %v251_v24, 1  ;;  %v1499_v43 = vld [vmem:[%s1970_s4] ss:$0 sm:$0xff]  ;;  %s1036_s26 = sshll.u32 %s1033_s25, 4  ;;  %s1037_s26 = int_to_ptr.hbm [resolvable:$true] %s1036_s26 }
  0x21   : > { %1159 = vmatpush.msra.mxu2 %v347_v10  ;;  %1160 = vmatpush.msra.mxu3 %v347_v10  ;;  %s1300_s6 = sshra.s32 %s1037_s26, 4  ;;  %s1301_s6 = int_to_ptr.hbm [resolvable:$true] %s1300_s6 }
  0x22   : > { %359 = vmatpush.msrb.mxu0 %v348_v8  ;;  %1152 = vmatpush.msrb.mxu1 %v349_v7  ;;  %s1302_s7 = scalar_lea.hbm %s1301_s6, 32  ;;  %p1307_p3 = scmp.lt.s32.totalorder %s1301_s6, %s1971_s5 }
  0x23   : > { %1162 = vmatpush.msra.mxu2 %v346_v11  ;;  %1163 = vmatpush.msra.mxu3 %v346_v11  ;;  %p1303_p0 = scmp.ne.s32.totalorder %s1301_s6, %s1302_s7  ;;  %p1308_p4 = scmp.lt.s32.totalorder %s1306_s10, %s1302_s7 }
  0x24   : > { %360 = vmatpush.msrb.mxu0 %v347_v10  ;;  %1155 = vmatpush.msrb.mxu1 %v348_v8  ;;  %v1359_v8 = vmov 2131351028  }
  0x25   : > { %1121 = vmatmul.msk.f32.gmra.mxu0 %vm257_vm0, %v244_v9  ;;  %1125 = vmatmul.msk.f32.gmra.mxu1 %vm257_vm0, %v244_v9  ;;  %p1304_p1 = pnand %p1303_p0, %p1434_p5  ;;  %p1309_p7 = por %p1308_p4, %p1307_p3 }
  0x26   : > { %361 = vmatpush.msrb.mxu0 %v346_v11  ;;  %1158 = vmatpush.msrb.mxu1 %v347_v10 }
  0x27   : > { %1165 = vmatpush.msra.mxu2 %v345_v12  ;;  %1166 = vmatpush.msra.mxu3 %v345_v12  ;;  %p1305_p2 = pneg %p1304_p1 }
  0x28   : > { %362 = vmatpush.msrb.mxu0 %v345_v12  ;;  %1161 = vmatpush.msrb.mxu1 %v346_v11  ;;  %v1360_v11 = vmov 2102212464  }
  0x29   : > { %1168 = vmatpush.msra.mxu2 %v344_v13  ;;  %1169 = vmatpush.msra.mxu3 %v344_v13  ;;  %p1310_p8 = pnand %p1309_p7, %p1305_p2 }
  0x2a   : > { %363 = vmatpush.msrb.mxu0 %v344_v13  ;;  %1164 = vmatpush.msrb.mxu1 %v345_v12 }
  0x2b   : > { %1171 = vmatpush.msra.mxu2 %v343_v15  ;;  %1172 = vmatpush.msra.mxu3 %v343_v15 }
  0x2c   : > { %364 = vmatpush.msrb.mxu0 %v343_v15  ;;  %1167 = vmatpush.msrb.mxu1 %v344_v13 }
  0x2d   : > { %1122 = vmatmul.msk.f32.gmra.mxu0 %vm257_vm0, %v245_v14  ;;  %1126 = vmatmul.msk.f32.gmra.mxu1 %vm257_vm0, %v245_v14  ;;  %v1361_v14 = vmov 920167782  }
  0x2e   : > { %365 = vmatpush.msrb.mxu0 %v342_v16  ;;  %1170 = vmatpush.msrb.mxu1 %v343_v15 }
  0x2f   : > { %1174 = vmatpush.msra.mxu2 %v342_v16  ;;  %1175 = vmatpush.msra.mxu3 %v342_v16 }
  0x30   : > { %366 = vmatpush.msrb.mxu0 %v341_v17  ;;  %1173 = vmatpush.msrb.mxu1 %v342_v16 }
  0x31   : > { %1177 = vmatpush.msra.mxu2 %v341_v17  ;;  %1178 = vmatpush.msra.mxu3 %v341_v17 }
  0x32   : > { %367 = vmatpush.msrb.mxu0 %v340_v18  ;;  %1176 = vmatpush.msrb.mxu1 %v341_v17  ;;  %v1362_v17 = vmov 1326507024  }
  0x33   : > { %1180 = vmatpush.msra.mxu2 %v340_v18  ;;  %1181 = vmatpush.msra.mxu3 %v340_v18 }
  0x34   : > { %368 = vmatpush.msrb.mxu0 %v339_v20  ;;  %1179 = vmatpush.msrb.mxu1 %v340_v18 }
  0x35   : > { %1123 = vmatmul.msk.f32.gmra.mxu0 %vm257_vm0, %v246_v19  ;;  %1127 = vmatmul.msk.f32.gmra.mxu1 %vm257_vm0, %v246_v19 }
  0x36   : > { %1182 = vmatpush.msrb.mxu1 %v339_v20  ;;  %1183 = vmatpush.msra.mxu2 %v339_v20 }
  0x37   : > { %1184 = vmatpush.msra.mxu3 %v339_v20  ;;  %369 = vmatpush.msrb.mxu0 %v338_v21 }
  0x38   : > { %1185 = vmatpush.msrb.mxu1 %v338_v21  ;;  %1186 = vmatpush.msra.mxu2 %v338_v21 }
  0x39   : > { %1187 = vmatpush.msra.mxu3 %v338_v21  ;;  %370 = vmatpush.msrb.mxu0 %v337_v22 }
  0x3a   : > { %1188 = vmatpush.msrb.mxu1 %v337_v22  ;;  %1189 = vmatpush.msra.mxu2 %v337_v22 }
  0x3b   : > { %1190 = vmatpush.msra.mxu3 %v337_v22  ;;  %371 = vmatpush.msrb.mxu0 %v336_v23 }
  0x3c   : > { %1191 = vmatpush.msrb.mxu1 %v336_v23  ;;  %1192 = vmatpush.msra.mxu2 %v336_v23 }
  0x3d   : > { %1193 = vmatpush.msra.mxu3 %v336_v23 }
  0x9a   : > { %v287_v26 = vpop.f32.mrf.mxu0  ;;  %v1487_v28 = vpop.f32.mrf.mxu1 }
  0x9b   : > { %v288_v27 = vadd.f32 %v287_v26, %v253_v25 }
  0x9d   : > { %v328_v29 = vmax.f32 %v288_v27, 0.0 }
  0x9f   : > { %372 = vmatmul.f32.vlgmr.msrb.gmra.mxu0 %v328_v29 }
  0xa2   : > { %v290_v30 = vpop.f32.mrf.mxu0  ;;  %v1489_v32 = vpop.f32.mrf.mxu1 }
  0xa3   : > { %v291_v31 = vadd.f32 %v290_v30, %v253_v25 }
  0xa5   : > { %v330_v33 = vmax.f32 %v291_v31, 0.0 }
  0xa7   : > { %375 = vmatmul.f32.vlgmr.msrb.gmra.mxu1 %v330_v33 }
  0xaa   : > { %v293_v34 = vpop.f32.mrf.mxu0  ;;  %v322_v37 = vpop.f32.mrf.mxu1 }
  0xab   : > { %v294_v35 = vadd.f32 %v293_v34, %v253_v25  ;;  %v1494_v39 = vadd.f32 %v322_v37, %v1491_v36 }
  0xad   : > { %v332_v38 = vmax.f32 %v294_v35, 0.0 }
  0xaf   : > { %378 = vmatmul.f32.vlgmr.msra.gmra.mxu2 %v332_v38 }
  0xb2   : > { %v296_v40 = vpop.f32.mrf.mxu0  ;;  %v1501_v44 = vpop.f32.mrf.mxu1 }
  0xb3   : > { %v297_v41 = vadd.f32 %v296_v40, %v253_v25 }
  0xb5   : > { %v334_v42 = vmax.f32 %v297_v41, 0.0 }
  0xb7   : > { %381 = vmatmul.f32.vlgmr.msra.gmra.mxu3 %v334_v42 }
 0x11c   : > { %v373_v45 = vpop.f32.mrf.mxu0 }
 0x11d   : > { %v1504_v46 = vadd.f32 %v1499_v43, %v373_v45 }
 0x11f   : > { %v385_v47 = vand.u32 2147483647, %v1504_v46  ;;  %v388_v48 = vand.u32 2139095040, %v1504_v46 }
 0x121   : > { %v389_v49 = vshrl.u32 %v388_v48, 23  ;;  %v392_v50 = vand.u32 8388607, %v385_v47 }
 0x123   : > { %v1128_v51 = vadd.s32 4294967169, %v389_v49  ;;  %v393_v52 = vor.u32 8388608, %v392_v50 }
 0x124   : > { %v376_v53 = vpop.f32.mrf.mxu1 }
 0x125   : > { %v395_v54 = vadd.s32 1, %v1128_v51  ;;  %v1511_v55 = vadd.f32 %v1499_v43, %v376_v53  ;;  %v1513_v56 = vshll.u32 %v393_v52, 8 }
 0x127   : > { %vm396_vm1 = vcmp.gt.s32.totalorder %v395_v54, 0  ;;  %v540_v58 = vand.u32 2147483647, %v1511_v55  ;;  %v543_v59 = vand.u32 2139095040, %v1511_v55  ;;  %v434_v62 = vand.u32 65535, %v1513_v56 }
 0x128   : > { %v397_v57 = vsel %vm396_vm1, %v395_v54, 0  ;;  %v435_v63 = vshrl.u32 %v1513_v56, 16 }
 0x129   : > { %v399_v60 = vand.u32 31, %v397_v57  ;;  %v544_v0 = vshrl.u32 %v543_v59, 23  ;;  %v398_v1 = vshrl.u32 %v397_v57, 5  ;;  %v1523_v6 = vand.u32 8388607, %v540_v58 }
 0x12b   : > { %v400_v61 = vsub.s32 32, %v399_v60  ;;  %v402_v3 = vshll.u32 %v1357_v2, %v399_v60  ;;  %v405_v5 = vshll.u32 %v1358_v4, %v399_v60  ;;  %v408_v10 = vshll.u32 %v1359_v8, %v399_v60 }
 0x12c   : > { %v411_v13 = vshll.u32 %v1360_v11, %v399_v60  ;;  %v414_v16 = vshll.u32 %v1361_v14, %v399_v60  ;;  %v1131_v22 = vadd.s32 4294967169, %v544_v0  ;;  %vm417_vm2 = vcmp.lt.s32.totalorder %v398_v1, 1 }
 0x12d   : > { %v403_v7 = vshrl.u32 %v1358_v4, %v400_v61  ;;  %v406_v9 = vshrl.u32 %v1359_v8, %v400_v61  ;;  %v409_v12 = vshrl.u32 %v1360_v11, %v400_v61  ;;  %v412_v15 = vshrl.u32 %v1361_v14, %v400_v61 }
 0x12e   : > { %v415_v18 = vshrl.u32 %v1362_v17, %v400_v61  ;;  %vm420_vm3 = vcmp.lt.s32.totalorder %v398_v1, 4  ;;  %v401_v25 = vshrl.u32 %v1357_v2, %v400_v61  ;;  %vm419_vm4 = vcmp.lt.s32.totalorder %v398_v1, 3 }
 0x12f   : > { %v404_v19 = vor.u32 %v403_v7, %v402_v3  ;;  %v407_v20 = vor.u32 %v406_v9, %v405_v5  ;;  %v410_v21 = vor.u32 %v409_v12, %v408_v10  ;;  %v413_v23 = vor.u32 %v412_v15, %v411_v13 }
 0x130   : > { %v416_v24 = vor.u32 %v415_v18, %v414_v16  ;;  %v550_v33 = vadd.s32 1, %v1131_v22  ;;  %vm418_vm5 = vcmp.lt.s32.totalorder %v398_v1, 2  ;;  %v548_v50 = vor.u32 8388608, %v1523_v6 }
 0x131   : > { %v422_v26 = vsel %vm420_vm3, %v410_v21, 2102212464  ;;  %v425_v27 = vsel %vm417_vm2, %v404_v19, %v407_v20  ;;  %v429_v29 = vsel %vm417_vm2, %v407_v20, %v410_v21  ;;  %v426_v30 = vsel %vm420_vm3, %v413_v23, 920167782 }
 0x132   : > { %v430_v31 = vsel %vm420_vm3, %v416_v24, 1326507024  ;;  %v421_v34 = vsel %vm417_vm2, %v401_v25, %v404_v19  ;;  %v427_v35 = vsel %vm419_vm4, %v410_v21, %v426_v30  ;;  %v423_v38 = vsel %vm419_vm4, %v407_v20, %v422_v26 }
 0x133   : > { %v431_v37 = vsel %vm419_vm4, %v413_v23, %v430_v31  ;;  %v428_v40 = vsel %vm418_vm5, %v425_v27, %v427_v35  ;;  %vm551_vm6 = vcmp.gt.s32.totalorder %v550_v33, 0  ;;  %v1535_v51 = vsel %vm418_vm5, %v421_v34, %v423_v38 }
 0x134   : > { %v432_v41 = vsel %vm418_vm5, %v429_v29, %v431_v37  ;;  %v458_v48 = vand.u32 65535, %v428_v40  ;;  %v459_v49 = vshrl.u32 %v428_v40, 16  ;;  %v552_v54 = vsel %vm551_vm6, %v550_v33, 0 }
 0x135   : > { %v436_v42 = vand.u32 65535, %v432_v41  ;;  %v437_v45 = vshrl.u32 %v432_v41, 16  ;;  %v554_v15 = vand.u32 31, %v552_v54  ;;  %v1363_v16 = vmov 0  }
 0x136   : > { %v461_v60 = vmul.u32 %v459_v49, %v434_v62  ;;  %v462_v61 = vmul.u32 %v458_v48, %v435_v63  ;;  %v460_v3 = vmul.u32 %v458_v48, %v434_v62  ;;  %v463_v5 = vmul.u32 %v459_v49, %v435_v63 }
 0x137   : > { %v439_v52 = vmul.u32 %v437_v45, %v434_v62  ;;  %v440_v53 = vmul.u32 %v436_v42, %v435_v63  ;;  %v438_v57 = vmul.u32 %v436_v42, %v434_v62  ;;  %v441_v59 = vmul.u32 %v437_v45, %v435_v63 }
 0x138   : > { %v464_v10 = vshll.u32 %v461_v60, 16  ;;  %v465_v12 = vshrl.u32 %v461_v60, 16  ;;  %v466_v6 = vshll.u32 %v462_v61, 16  ;;  %v467_v19 = vshrl.u32 %v462_v61, 16 }
 0x139   : > { %v442_v0 = vshll.u32 %v439_v52, 16  ;;  %v443_v1 = vshrl.u32 %v439_v52, 16  ;;  %v444_v7 = vshll.u32 %v440_v53, 16  ;;  %v445_v9 = vshrl.u32 %v440_v53, 16 }
 0x13a   : > { %vm468_vm8 = vc.u32 %v460_v3, %v464_v10  ;;  %v470_v20 = vadd.s32 %v464_v10, %v460_v3  ;;  %v1539_v62 = vsub.s32 32, %v554_v15  ;;  %v1542_v24 = vshrl.u32 %v552_v54, 5 }
 0x13b   : > { %vm446_vm7 = vc.u32 %v438_v57, %v442_v0  ;;  %v448_v13 = vadd.s32 %v442_v0, %v438_v57  ;;  %v469_v22 = vsel %vm468_vm8, 1, %v1363_v16  ;;  %v557_v29 = vshll.u32 %v1357_v2, %v554_v15 }
 0x13c   : > { %v447_v18 = vsel %vm446_vm7, 1, %v1363_v16  ;;  %v471_v23 = vadd.s32 %v469_v22, %v463_v5  ;;  %vm472_vm10 = vc.u32 %v470_v20, %v466_v6  ;;  %v1545_v27 = vadd.s32 %v470_v20, %v466_v6 }
 0x13d   : > { %v449_v21 = vadd.s32 %v447_v18, %v441_v59  ;;  %vm450_vm9 = vc.u32 %v448_v13, %v444_v7  ;;  %v473_v26 = vsel %vm472_vm10, 1, %v1363_v16  ;;  %v558_v31 = vshrl.u32 %v1358_v4, %v1539_v62 }
 0x13e   : > { %v451_v63 = vsel %vm450_vm9, 1, %v1363_v16  ;;  %v475_v30 = vadd.s32 %v473_v26, %v471_v23  ;;  %v560_v33 = vshll.u32 %v1358_v4, %v554_v15  ;;  %v561_v34 = vshrl.u32 %v1359_v8, %v1539_v62 }
 0x13f   : > { %v453_v25 = vadd.s32 %v451_v63, %v449_v21  ;;  %v563_v37 = vshll.u32 %v1359_v8, %v554_v15  ;;  %v564_v38 = vshrl.u32 %v1360_v11, %v1539_v62  ;;  %v566_v40 = vshll.u32 %v1360_v11, %v554_v15  ;;  %v379_v63 = vpop.f32.mrf.mxu2 }
 0x140   : > { %v476_v41 = vadd.s32 %v475_v30, %v465_v12  ;;  %v1557_v42 = vor.u32 %v558_v31, %v557_v29  ;;  %v1559_v45 = vor.u32 %v561_v34, %v560_v33  ;;  %v567_v48 = vshrl.u32 %v1361_v14, %v1539_v62 }
 0x141   : > { %v454_v35 = vadd.s32 %v453_v25, %v443_v1  ;;  %v565_v52 = vor.u32 %v564_v38, %v563_v37  ;;  %v569_v53 = vshll.u32 %v1361_v14, %v554_v15  ;;  %v570_v54 = vshrl.u32 %v1362_v17, %v1539_v62 }
 0x142   : > { %v477_v57 = vadd.s32 %v476_v41, %v467_v19  ;;  %v568_v59 = vor.u32 %v567_v48, %v566_v40  ;;  %vm572_vm12 = vcmp.lt.s32.totalorder %v1542_v24, 1  ;;  %v1571_v61 = vshll.u32 %v548_v50, 8 }
 0x143   : > { %v1563_v49 = vadd.s32 %v454_v35, %v445_v9  ;;  %v571_v60 = vor.u32 %v570_v54, %v569_v53  ;;  %v478_v0 = vmul.u32 %v1513_v56, %v1535_v51  ;;  %vm575_vm13 = vcmp.lt.s32.totalorder %v1542_v24, 4 }
 0x144   : > { %v481_v1 = vadd.s32 1, %v477_v57  ;;  %v580_v3 = vsel %vm572_vm12, %v1557_v42, %v1559_v45  ;;  %vm574_vm14 = vcmp.lt.s32.totalorder %v1542_v24, 3  ;;  %v581_v5 = vsel %vm575_vm13, %v568_v59, 920167782 }
 0x145   : > { %vm480_vm11 = vc.u32 %v1563_v49, %v1545_v27  ;;  %v584_v50 = vsel %vm572_vm12, %v1559_v45, %v565_v52  ;;  %v585_v56 = vsel %vm575_vm13, %v571_v60, 1326507024  ;;  %vm573_vm15 = vcmp.lt.s32.totalorder %v1542_v24, 2 }
 0x146   : > { %v482_v51 = vsel %vm480_vm11, %v481_v1, %v477_v57  ;;  %v582_v7 = vsel %vm574_vm14, %v565_v52, %v581_v5  ;;  %v586_v9 = vsel %vm574_vm14, %v568_v59, %v585_v56  ;;  %v589_v6 = vand.u32 65535, %v1571_v61 }
 0x147   : > { %v483_v10 = vadd.s32 %v482_v51, %v478_v0  ;;  %v583_v12 = vsel %vm573_vm15, %v580_v3, %v582_v7  ;;  %v587_v13 = vsel %vm573_vm15, %v584_v50, %v586_v9  ;;  %v590_v15 = vshrl.u32 %v1571_v61, 16 }
 0x148   : > { %v591_v18 = vand.u32 65535, %v587_v13  ;;  %v592_v19 = vshrl.u32 %v587_v13, 16  ;;  %v614_v20 = vshrl.u32 %v583_v12, 16  ;;  %v613_v22 = vand.u32 65535, %v583_v12 }
 0x149   : > { %v484_v21 = vadd.s32 536870912, %v483_v10  ;;  %v1600_v33 = vadd.f32 %v1499_v43, %v379_v63  ;;  %v577_v54 = vsel %vm575_vm13, %v565_v52, 2102212464  ;;  %vm387_vm4 = vcmp.lt.s32.totalorder %v1504_v46, 0 }
 0x14a   : > { %v594_v23 = vmul.u32 %v592_v19, %v589_v6  ;;  %v595_v25 = vmul.u32 %v591_v18, %v590_v15  ;;  %v616_v29 = vmul.u32 %v614_v20, %v589_v6  ;;  %v593_v30 = vmul.u32 %v591_v18, %v589_v6 }
 0x14b   : > { %v485_v26 = vshrl.u32 %v484_v21, 30  ;;  %v596_v35 = vmul.u32 %v592_v19, %v590_v15  ;;  %v617_v37 = vmul.u32 %v613_v22, %v590_v15  ;;  %v615_v48 = vmul.u32 %v613_v22, %v589_v6 }
 0x14c   : > { %v597_v31 = vshll.u32 %v594_v23, 16  ;;  %v619_v38 = vshll.u32 %v616_v29, 16  ;;  %v599_v40 = vshll.u32 %v595_v25, 16  ;;  %v598_v57 = vshrl.u32 %v594_v23, 16 }
 0x14d   : > { %v486_v34 = vshll.u32 %v485_v26, 30  ;;  %v618_v0 = vmul.u32 %v614_v20, %v590_v15  ;;  %v621_v5 = vshll.u32 %v617_v37, 16  ;;  %v698_v7 = vand.u32 2139095040, %v1600_v33 }
 0x14e   : > { %vm601_vm0 = vc.u32 %v593_v30, %v597_v31  ;;  %v603_v41 = vadd.s32 %v597_v31, %v593_v30  ;;  %vm623_vm2 = vc.u32 %v615_v48, %v619_v38  ;;  %v625_v51 = vadd.s32 %v619_v38, %v615_v48 }
 0x14f   : > { %v487_v53 = vsub.s32 %v483_v10, %v486_v34  ;;  %v602_v59 = vsel %vm601_vm0, 1, %v1363_v16  ;;  %v624_v56 = vsel %vm623_vm2, 1, %v1363_v16  ;;  %v509_v52 = vsub.s32 4, %v485_v26 }
 0x150   : > { %v604_v60 = vadd.s32 %v602_v59, %v596_v35  ;;  %vm605_vm1 = vc.u32 %v603_v41, %v599_v40  ;;  %v556_v10 = vshrl.u32 %v1357_v2, %v1539_v62  ;;  %v626_v12 = vadd.s32 %v624_v56, %v618_v0 }
 0x151   : > { %vm488_vm3 = vcmp.lt.s32.totalorder %v487_v53, 0  ;;  %v489_v1 = vsub.s32 0, %v487_v53  ;;  %v606_v3 = vsel %vm605_vm1, 1, %v1363_v16  ;;  %vm627_vm5 = vc.u32 %v625_v51, %v621_v5 }
 0x152   : > { %v608_v50 = vadd.s32 %v606_v3, %v604_v60  ;;  %v576_v15 = vsel %vm572_vm12, %v556_v10, %v1557_v42  ;;  %v578_v18 = vsel %vm574_vm14, %v1559_v45, %v577_v54  ;;  %v600_v19 = vshrl.u32 %v595_v25, 16 }
 0x153   : > { %v490_v9 = vsel %vm488_vm3, %v489_v1, %v487_v53  ;;  %v628_v20 = vsel %vm627_vm5, 1, %v1363_v16  ;;  %v620_v22 = vshrl.u32 %v616_v29, 16  ;;  %v699_v63 = vshrl.u32 %v698_v7, 23  ;;  %v382_v7 = vpop.f32.mrf.mxu3 }
 0x154   : > { %v491_v13 = vclz %v490_v9  ;;  %v609_v6 = vadd.s32 %v608_v50, %v598_v57  ;;  %v630_v62 = vadd.s32 %v628_v20, %v626_v12  ;;  %vm1620_vm6 = vcmp.le.f32.partialorder %v385_v47, 0.7853982 }
 0x155   : > { %v510_v42 = vsel %vm387_vm4, %v509_v52, %v485_v26  ;;  %v695_v31 = vand.u32 2147483647, %v1600_v33  ;;  %v479_v45 = vadd.s32 %v1545_v27, %v1563_v49  ;;  %v622_v25 = vshrl.u32 %v617_v37, 16 }
 0x156   : > { %v1129_v21 = vadd.s32 4294967294, %v491_v13  ;;  %v610_v30 = vadd.s32 %v609_v6, %v600_v19  ;;  %v631_v29 = vadd.s32 %v630_v62, %v620_v22  ;;  %v579_v35 = vsel %vm573_vm15, %v576_v15, %v578_v18 }
 0x157   : > { %v629_v47 = vadd.s32 %v625_v51, %v621_v5  ;;  %v1134_v38 = vadd.s32 4294967169, %v699_v63  ;;  %v512_v26 = vsel %vm1620_vm6, 0, %v510_v42  ;;  %v702_v54 = vand.u32 8388607, %v695_v31 }
 0x158   : > { %vm1130_vm7 = vcmp.lt.s32.totalorder %v1129_v21, 0  ;;  %v632_v48 = vadd.s32 %v631_v29, %v622_v25  ;;  %v1637_v24 = vadd.f32 %v1487_v28, %v1491_v36  ;;  %v529_v60 = vadd.s32 3, %v512_v26 }
 0x159   : > { %v494_v34 = vsel %vm1130_vm7, 0, %v1129_v21  ;;  %vm635_vm8 = vc.u32 %v610_v30, %v629_v47  ;;  %v705_v27 = vadd.s32 1, %v1134_v38  ;;  %v633_v0 = vmul.u32 %v1571_v61, %v579_v35 }
 0x15a   : > { %v495_v40 = vsub.s32 32, %v494_v34  ;;  %v499_v41 = vsub.s32 4294967266, %v494_v34  ;;  %v496_v49 = vshll.u32 %v487_v53, %v494_v34  ;;  %v636_v59 = vadd.s32 1, %v632_v48 }
 0x15b   : > { %vm706_vm9 = vcmp.gt.s32.totalorder %v705_v27, 0  ;;  %v703_v53 = vor.u32 8388608, %v702_v54  ;;  %v329_v52 = vmax.f32 %v1637_v24, 0.0  ;;  %v1643_v6 = vand.u32 3, %v529_v60 }
 0x15c   : > { %v497_v37 = vshrl.u32 %v479_v45, %v495_v40  ;;  %v500_v57 = vadd.s32 127, %v499_v41  ;;  %v637_v5 = vsel %vm635_vm8, %v636_v59, %v632_v48  ;;  %v707_v50 = vsel %vm706_vm9, %v705_v27, 0 }
 0x15d   : > { %v638_v56 = vadd.s32 %v637_v5, %v633_v0  ;;  %v709_v51 = vand.u32 31, %v707_v50  ;;  %v1646_v61 = vadd.f32 %v1499_v43, %v382_v7  ;;  %v1648_v15 = vadd.s32 %v629_v47, %v610_v30 }
 0x15e   : > { %v498_v1 = vor.u32 %v497_v37, %v496_v49  ;;  %v501_v3 = vshll.u32 %v500_v57, 23  ;;  %v1659_v63 = vshll.u32 %v703_v53, 8  ;;  %v1666_v29 = vshrl.u32 %v707_v50, 5 }
 0x15f   : > { %v639_v10 = vadd.s32 536870912, %v638_v56  ;;  %v1641_v12 = vsub.s32 32, %v709_v51  ;;  %v712_v22 = vshll.u32 %v1357_v2, %v709_v51  ;;  %v715_v42 = vshll.u32 %v1358_v4, %v709_v51 }
 0x160   : > { %v502_v9 = vor.u32 4788187, %v501_v3  ;;  %v505_v13 = vcvt.s32.f32 %v498_v1  ;;  %v721_v45 = vshll.u32 %v1360_v11, %v709_v51  ;;  %v718_v34 = vshll.u32 %v1359_v8, %v709_v51 }
 0x161   : > { %v1650_v18 = vshrl.u32 %v639_v10, 30  ;;  %v713_v19 = vshrl.u32 %v1358_v4, %v1641_v12  ;;  %v716_v20 = vshrl.u32 %v1359_v8, %v1641_v12  ;;  %v722_v62 = vshrl.u32 %v1361_v14, %v1641_v12 }
 0x162   : > { %v503_v28 = vand.u32 2147483647, %v502_v9  ;;  %v719_v30 = vshrl.u32 %v1360_v11, %v1641_v12  ;;  %v725_v35 = vshrl.u32 %v1362_v17, %v1641_v12  ;;  %v724_v48 = vshll.u32 %v1361_v14, %v709_v51 }
 0x163   : > { %v641_v43 = vshll.u32 %v1650_v18, 30  ;;  %v1673_v38 = vor.u32 %v713_v19, %v712_v22  ;;  %v1675_v40 = vor.u32 %v716_v20, %v715_v42  ;;  %v723_v41 = vor.u32 %v722_v62, %v721_v45 }
 0x164   : > { %v506_v21 = vmul.f32 %v505_v13, %v503_v28  ;;  %v1681_v54 = vand.u32 65535, %v1659_v63  ;;  %v850_v27 = vand.u32 2147483647, %v1646_v61  ;;  %v1691_v57 = vor.u32 %v719_v30, %v718_v34 }
 0x165   : > { %v1671_v47 = vsub.s32 %v638_v56, %v641_v43  ;;  %vm542_vm11 = vcmp.lt.s32.totalorder %v1511_v55, 0  ;;  %vm727_vm12 = vcmp.lt.s32.totalorder %v1666_v29, 1  ;;  %vm730_vm13 = vcmp.lt.s32.totalorder %v1666_v29, 4 }
 0x166   : > { %v507_v25 = vxor.u32 2147483648, %v506_v21  ;;  %v1699_v60 = vshrl.u32 %v1659_v63, 16  ;;  %v726_v0 = vor.u32 %v725_v35, %v724_v48  ;;  %v735_v1 = vsel %vm727_vm12, %v1673_v38, %v1675_v40 }
 0x167   : > { %vm643_vm10 = vcmp.lt.s32.totalorder %v1671_v47, 0  ;;  %v644_v37 = vsub.s32 0, %v1671_v47  ;;  %v736_v3 = vsel %vm730_vm13, %v723_v41, 920167782  ;;  %vm729_vm14 = vcmp.lt.s32.totalorder %v1666_v29, 3 }
 0x168   : > { %v508_v26 = vsel %vm387_vm4, %v507_v25, %v506_v21  ;;  %vm728_vm15 = vcmp.lt.s32.totalorder %v1666_v29, 2  ;;  %v737_v51 = vsel %vm729_vm14, %v1691_v57, %v736_v3  ;;  %v853_v7 = vand.u32 2139095040, %v1646_v61 }
 0x169   : > { %v1687_v49 = vsel %vm1620_vm6, %v1504_v46, %v508_v26  ;;  %v645_v23 = vsel %vm643_vm10, %v644_v37, %v1671_v47  ;;  %v1716_v9 = vand.u32 8388607, %v850_v27  ;;  %v738_v13 = vsel %vm728_vm15, %v735_v1, %v737_v51 }
 0x16a   : > { %v513_v59 = vmul.f32 %v1687_v49, %v1687_v49  ;;  %v646_v56 = vclz %v645_v23  ;;  %v664_v19 = vsub.s32 4, %v1650_v18  ;;  %v739_v20 = vsel %vm727_vm12, %v1675_v40, %v1691_v57 }
 0x16b   : > { %v740_v21 = vsel %vm730_vm13, %v726_v0, 1326507024  ;;  %v769_v22 = vshrl.u32 %v738_v13, 16  ;;  %v1731_v45 = vshrl.u32 %v1357_v2, %v1641_v12  ;;  %v1735_v34 = vshrl.u32 %v853_v7, 23 }
 0x16c   : > { %v514_v5 = vmul.f32 -0.001358992, %v513_v59  ;;  %v521_v50 = vmul.f32 -0.00019511016, %v513_v59  ;;  %v1132_v28 = vadd.s32 4294967294, %v646_v56  ;;  %v741_v42 = vsel %vm729_vm14, %v723_v41, %v740_v21 }
 0x16d   : > { %v742_v25 = vsel %vm728_vm15, %v739_v20, %v741_v42  ;;  %v768_v37 = vand.u32 65535, %v738_v13  ;;  %vm532_vm1 = vcmp.eq.s32.totalorder %v1643_v6, 0  ;;  %vm535_vm2 = vcmp.eq.s32.totalorder %v1643_v6, 2 }
 0x16e   : > { %v515_v53 = vadd.f32 0.041655596, %v514_v5  ;;  %v522_v10 = vadd.f32 0.008332121, %v521_v50  ;;  %vm1133_vm0 = vcmp.lt.s32.totalorder %v1132_v28, 0  ;;  %v1742_v41 = vsel %vm542_vm11, %v664_v19, %v1650_v18 }
 0x16f   : > { %v649_v30 = vsel %vm1133_vm0, 0, %v1132_v28  ;;  %v746_v12 = vand.u32 65535, %v742_v25  ;;  %v747_v0 = vshrl.u32 %v742_v25, 16  ;;  %vm531_vm3 = vcmp.lt.s32.totalorder %v1643_v6, 2 }
 0x170   : > { %v516_v62 = vmul.f32 %v515_v53, %v513_v59  ;;  %v523_v43 = vmul.f32 %v522_v10, %v513_v59  ;;  %v650_v48 = vsub.s32 32, %v649_v30  ;;  %v654_v23 = vsub.s32 4294967266, %v649_v30 }
 0x171   : > { %v1747_v50 = vmul.u32 %v769_v22, %v1681_v54  ;;  %vm528_vm4 = vweird.f32 %v1504_v46  ;;  %v651_v56 = vshll.u32 %v1671_v47, %v649_v30  ;;  %v749_v7 = vmul.u32 %v747_v0, %v1681_v54 }
 0x172   : > { %v517_v35 = vadd.f32 -0.4999988, %v516_v62  ;;  %v524_v26 = vadd.f32 -0.16666654, %v523_v43  ;;  %v652_v5 = vshrl.u32 %v1648_v15, %v650_v48  ;;  %v655_v51 = vadd.s32 127, %v654_v23 }
 0x173   : > { %v750_v18 = vmul.u32 %v746_v12, %v1699_v60  ;;  %v1755_v28 = vmul.u32 %v768_v37, %v1699_v60  ;;  %vm1759_vm5 = vcmp.le.f32.partialorder %v540_v58, 0.7853982  ;;  %v748_v19 = vmul.u32 %v746_v12, %v1681_v54 }
 0x174   : > { %v518_v1 = vmul.f32 %v517_v35, %v513_v59  ;;  %v525_v3 = vmul.f32 %v524_v26, %v513_v59  ;;  %v770_v59 = vmul.u32 %v768_v37, %v1681_v54  ;;  %v653_v13 = vor.u32 %v652_v5, %v651_v56 }
 0x175   : > { %v656_v47 = vshll.u32 %v655_v51, 23  ;;  %v752_v20 = vshll.u32 %v749_v7, 16  ;;  %v751_v43 = vmul.u32 %v747_v0, %v1699_v60  ;;  %v754_v42 = vshll.u32 %v750_v18, 16 }
 0x176   : > { %v519_v53 = vadd.f32 1.0, %v518_v1  ;;  %v526_v10 = vadd.f32 1.0, %v525_v3  ;;  %v774_v58 = vshll.u32 %v1747_v50, 16  ;;  %v753_v26 = vshrl.u32 %v749_v7, 16 }
 0x177   : > { %v657_v30 = vor.u32 4788187, %v656_v47  ;;  %vm756_vm6 = vc.u32 %v748_v19, %v752_v20  ;;  %v758_v25 = vadd.s32 %v752_v20, %v748_v19  ;;  %v773_v37 = vmul.u32 %v769_v22, %v1699_v60 }
 0x178   : > { %v527_v21 = vmul.f32 %v526_v10, %v1687_v49  ;;  %v536_v62 = vxor.u32 2147483648, %v519_v53  ;;  %v757_v48 = vsel %vm756_vm6, 1, %v1363_v16  ;;  %v660_v23 = vcvt.s32.f32 %v653_v13 }
 0x179   : > { %v658_v54 = vand.u32 2147483647, %v657_v30  ;;  %v759_v49 = vadd.s32 %v757_v48, %v751_v43  ;;  %vm760_vm7 = vc.u32 %v758_v25, %v754_v42  ;;  %vm778_vm8 = vc.u32 %v770_v59, %v774_v58 }
 0x17a   : > { %v533_v35 = vxor.u32 2147483648, %v527_v21  ;;  %v537_v0 = vsel %vm535_vm2, %v536_v62, %v527_v21  ;;  %v761_v1 = vsel %vm760_vm7, 1, %v1363_v16  ;;  %v779_v22 = vsel %vm778_vm8, 1, %v1363_v16 }
 0x17b   : > { %v661_v5 = vmul.f32 %v660_v23, %v658_v54  ;;  %v763_v60 = vadd.s32 %v761_v1, %v759_v49  ;;  %v776_v51 = vshll.u32 %v1755_v28, 16  ;;  %v780_v7 = vadd.s32 %v774_v58, %v770_v59 }
 0x17c   : > { %v534_v12 = vsel %vm532_vm1, %v519_v53, %v533_v35  ;;  %v781_v53 = vadd.s32 %v779_v22, %v773_v37  ;;  %v1137_v19 = vadd.s32 4294967169, %v1735_v34  ;;  %v667_v6 = vsel %vm1759_vm5, 0, %v1742_v41 }
 0x17d   : > { %v538_v3 = vsel %vm531_vm3, %v534_v12, %v537_v0  ;;  %v662_v13 = vxor.u32 2147483648, %v661_v5  ;;  %v764_v47 = vadd.s32 %v763_v60, %v753_v26  ;;  %v731_v46 = vsel %vm727_vm12, %v1731_v45, %v1673_v38 }
 0x17e   : > { %v539_v56 = vsel %vm528_vm4, nan, %v538_v3  ;;  %v732_v59 = vsel %vm730_vm13, %v1691_v57, 2102212464  ;;  %vm782_vm9 = vc.u32 %v780_v7, %v776_v51  ;;  %v755_v21 = vshrl.u32 %v750_v18, 16 }
 0x17f   : > { %v1005_v10 = vmax.f32 %v539_v56, 0.0  ;;  %v663_v34 = vsel %vm542_vm11, %v662_v13, %v661_v5  ;;  %v783_v62 = vsel %vm782_vm9, 1, %v1363_v16  ;;  %v775_v38 = vshrl.u32 %v1747_v50, 16 }
 0x180   : > { %v666_v41 = vsel %vm1759_vm5, %v1511_v55, %v663_v34  ;;  %v785_v45 = vadd.s32 %v783_v62, %v781_v53  ;;  %v860_v43 = vadd.s32 1, %v1137_v19  ;;  %v733_v24 = vsel %vm729_vm14, %v1675_v40, %v732_v59 }
 0x181   : > { %v1009_v20 = vadd.f32 %v1005_v10, %v329_v52  ;;  %v668_v57 = vmul.f32 %v666_v41, %v666_v41  ;;  %v1806_v52 = vadd.s32 %v764_v47, %v755_v21  ;;  %v684_v30 = vadd.s32 3, %v667_v6 }
 0x182   : > { %v777_v18 = vshrl.u32 %v1755_v28, 16  ;;  %v786_v25 = vadd.s32 %v785_v45, %v775_v38  ;;  %vm861_vm10 = vcmp.gt.s32.totalorder %v860_v43, 0  ;;  %v1812_v58 = vadd.s32 %v780_v7, %v776_v51 }
 0x183   : > { %v1013_v42 = vmul.f32 0.5, %v1009_v20  ;;  %v669_v50 = vmul.f32 -0.001358992, %v668_v57  ;;  %v676_v15 = vmul.f32 -0.00019511016, %v668_v57  ;;  %v862_v35 = vsel %vm861_vm10, %v860_v43, 0 }
 0x184   : > { %v734_v26 = vsel %vm728_vm15, %v731_v46, %v733_v24  ;;  %v787_v40 = vadd.s32 %v786_v25, %v777_v18  ;;  %v864_v48 = vand.u32 31, %v862_v35  ;;  %v1818_v37 = vadd.f32 %v1489_v32, %v1491_v36 }
 0x185   : > { %1017 = vst [vmem:[%s1809_s15] sm:$0xff] %v1013_v42  ;;  %v670_v28 = vadd.f32 0.041655596, %v669_v50  ;;  %v677_v54 = vadd.f32 0.008332121, %v676_v15  ;;  %vm790_vm11 = vc.u32 %v1806_v52, %v1812_v58  ;;  %v685_v23 = vand.u32 3, %v684_v30 }
 0x186   : > { %v791_v49 = vadd.s32 1, %v787_v40  ;;  %v858_v12 = vor.u32 8388608, %v1716_v9  ;;  %v1823_v0 = vsub.s32 32, %v864_v48  ;;  %v788_v3 = vmul.u32 %v1659_v63, %v734_v26 }
 0x187   : > { %v671_v1 = vmul.f32 %v670_v28, %v668_v57  ;;  %v678_v29 = vmul.f32 %v677_v54, %v668_v57  ;;  %v1826_v5 = vshrl.u32 %v862_v35, 5  ;;  %v867_v32 = vshll.u32 %v1357_v2, %v864_v48 }
 0x188   : > { %v792_v60 = vsel %vm790_vm11, %v791_v49, %v787_v40  ;;  %v868_v22 = vshrl.u32 %v1358_v4, %v1823_v0  ;;  %v871_v56 = vshrl.u32 %v1359_v8, %v1823_v0  ;;  %v874_v53 = vshrl.u32 %v1360_v11, %v1823_v0 }
 0x189   : > { %v672_v51 = vadd.f32 -0.4999988, %v671_v1  ;;  %v679_v7 = vadd.f32 -0.16666654, %v678_v29  ;;  %v793_v9 = vadd.s32 %v792_v60, %v788_v3  ;;  %v870_v10 = vshll.u32 %v1358_v4, %v864_v48 }
 0x18a   : > { %v873_v63 = vshll.u32 %v1359_v8, %v864_v48  ;;  %v876_v13 = vshll.u32 %v1360_v11, %v864_v48  ;;  %v877_v47 = vshrl.u32 %v1361_v14, %v1823_v0  ;;  %v1840_v59 = vor.u32 %v868_v22, %v867_v32 }
 0x18b   : > { %v673_v19 = vmul.f32 %v672_v51, %v668_v57  ;;  %v680_v6 = vmul.f32 %v679_v7, %v668_v57  ;;  %v794_v46 = vadd.s32 536870912, %v793_v9  ;;  %v1842_v20 = vor.u32 %v871_v56, %v870_v10 }
 0x18c   : > { %v878_v34 = vor.u32 %v877_v47, %v876_v13  ;;  %v879_v21 = vshll.u32 %v1361_v14, %v864_v48  ;;  %v880_v4 = vshrl.u32 %v1362_v17, %v1823_v0  ;;  %v1849_v11 = vor.u32 %v874_v53, %v873_v63 }
 0x18d   : > { %v674_v62 = vadd.f32 1.0, %v673_v19  ;;  %v681_v8 = vadd.f32 1.0, %v680_v6  ;;  %v1847_v38 = vshrl.u32 %v794_v46, 30  ;;  %vm686_vm12 = vcmp.lt.s32.totalorder %v685_v23, 2 }
 0x18e   : > { %vm687_vm13 = vcmp.eq.s32.totalorder %v685_v23, 0  ;;  %vm690_vm14 = vcmp.eq.s32.totalorder %v685_v23, 2  ;;  %v881_v45 = vor.u32 %v880_v4, %v879_v21  ;;  %vm885_vm15 = vcmp.lt.s32.totalorder %v1826_v5, 4 }
 0x18f   : > { %v682_v43 = vmul.f32 %v681_v8, %v666_v41  ;;  %v691_v42 = vxor.u32 2147483648, %v674_v62  ;;  %v796_v57 = vshll.u32 %v1847_v38, 30  ;;  %vm882_vm0 = vcmp.lt.s32.totalorder %v1826_v5, 1 }
 0x190   : > { %vm884_vm1 = vcmp.lt.s32.totalorder %v1826_v5, 3  ;;  %v891_v14 = vsel %vm885_vm15, %v878_v34, 920167782  ;;  %v895_v17 = vsel %vm885_vm15, %v881_v45, 1326507024  ;;  %v890_v41 = vsel %vm882_vm0, %v1840_v59, %v1842_v20 }
 0x191   : > { %v688_v24 = vxor.u32 2147483648, %v682_v43  ;;  %v797_v30 = vsub.s32 %v793_v9, %v796_v57  ;;  %v894_v18 = vsel %vm882_vm0, %v1842_v20, %v1849_v11  ;;  %vm883_vm2 = vcmp.lt.s32.totalorder %v1826_v5, 2 }
 0x192   : > { %v892_v25 = vsel %vm884_vm1, %v1849_v11, %v891_v14  ;;  %v896_v50 = vsel %vm884_vm1, %v878_v34, %v895_v17  ;;  %v1873_v15 = vshll.u32 %v858_v12, 8  ;;  %v692_v26 = vsel %vm690_vm14, %v691_v42, %v682_v43 }
 0x193   : > { %v689_v35 = vsel %vm687_vm13, %v674_v62, %v688_v24  ;;  %vm798_vm3 = vcmp.lt.s32.totalorder %v797_v30, 0  ;;  %v799_v40 = vsub.s32 0, %v797_v30  ;;  %vm683_vm4 = vweird.f32 %v1511_v55 }
 0x194   : > { %v693_v48 = vsel %vm686_vm12, %v689_v35, %v692_v26  ;;  %v893_v28 = vsel %vm883_vm2, %v890_v41, %v892_v25  ;;  %v897_v54 = vsel %vm883_vm2, %v894_v18, %v896_v50  ;;  %v331_v49 = vmax.f32 %v1818_v37, 0.0 }
 0x195   : > { %v694_v12 = vsel %vm683_vm4, nan, %v693_v48  ;;  %v800_v1 = vsel %vm798_vm3, %v799_v40, %v797_v30  ;;  %v901_v29 = vand.u32 65535, %v897_v54  ;;  %v899_v32 = vand.u32 65535, %v1873_v15 }
 0x196   : > { %v1006_v3 = vmax.f32 %v694_v12, 0.0  ;;  %v801_v60 = vclz %v800_v1  ;;  %v902_v22 = vshrl.u32 %v897_v54, 16  ;;  %v900_v55 = vshrl.u32 %v1873_v15, 16 }
 0x197   : > { %v923_v23 = vand.u32 65535, %v893_v28  ;;  %v789_v9 = vadd.s32 %v1812_v58, %v1806_v52  ;;  %v924_v37 = vshrl.u32 %v893_v28, 16  ;;  %v903_v63 = vmul.u32 %v901_v29, %v899_v32 }
 0x198   : > { %v1010_v56 = vadd.f32 %v1006_v3, %v331_v49  ;;  %v1135_v51 = vadd.s32 4294967294, %v801_v60  ;;  %v904_v7 = vmul.u32 %v902_v22, %v899_v32  ;;  %v905_v53 = vmul.u32 %v901_v29, %v900_v55 }
 0x199   : > { %v906_v19 = vmul.u32 %v902_v22, %v900_v55  ;;  %v925_v6 = vmul.u32 %v923_v23, %v899_v32  ;;  %v926_v46 = vmul.u32 %v924_v37, %v899_v32  ;;  %v927_v4 = vmul.u32 %v923_v23, %v900_v55 }
 0x19a   : > { %v1014_v10 = vmul.f32 0.5, %v1010_v56  ;;  %vm1136_vm5 = vcmp.lt.s32.totalorder %v1135_v51, 0  ;;  %v907_v13 = vshll.u32 %v904_v7, 16  ;;  %v909_v62 = vshll.u32 %v905_v53, 16 }
 0x19b   : > { %v804_v47 = vsel %vm1136_vm5, 0, %v1135_v51  ;;  %v929_v52 = vshll.u32 %v926_v46, 16  ;;  %v908_v14 = vshrl.u32 %v904_v7, 16  ;;  %v928_v17 = vmul.u32 %v924_v37, %v900_v55 }
 0x19c   : > { %1018 = vst [vmem:[%s1809_s15 + $0x8] sm:$0xff] %v1014_v10  ;;  %v805_v34 = vsub.s32 32, %v804_v47  ;;  %v809_v21 = vsub.s32 4294967266, %v804_v47  ;;  %vm911_vm6 = vc.u32 %v903_v63, %v907_v13  ;;  %v913_v45 = vadd.s32 %v907_v13, %v903_v63 }
 0x19d   : > { %v912_v8 = vsel %vm911_vm6, 1, %v1363_v16  ;;  %v806_v58 = vshll.u32 %v797_v30, %v804_v47  ;;  %vm933_vm8 = vc.u32 %v925_v6, %v929_v52  ;;  %v931_v35 = vshll.u32 %v927_v4, 16 }
 0x19e   : > { %v807_v43 = vshrl.u32 %v789_v9, %v805_v34  ;;  %v810_v42 = vadd.s32 127, %v809_v21  ;;  %v914_v57 = vadd.s32 %v912_v8, %v906_v19  ;;  %vm915_vm7 = vc.u32 %v913_v45, %v909_v62 }
 0x19f   : > { %v916_v18 = vsel %vm915_vm7, 1, %v1363_v16  ;;  %v934_v25 = vsel %vm933_vm8, 1, %v1363_v16  ;;  %v935_v26 = vadd.s32 %v929_v52, %v925_v6  ;;  %v866_v30 = vshrl.u32 %v1357_v2, %v1823_v0 }
 0x1a0   : > { %v808_v24 = vor.u32 %v807_v43, %v806_v58  ;;  %v811_v41 = vshll.u32 %v810_v42, 23  ;;  %v918_v50 = vadd.s32 %v916_v18, %v914_v57  ;;  %v936_v40 = vadd.s32 %v934_v25, %v928_v17 }
 0x1a1   : > { %v887_v28 = vsel %vm885_vm15, %v1849_v11, 2102212464  ;;  %vm937_vm9 = vc.u32 %v935_v26, %v931_v35  ;;  %v910_v1 = vshrl.u32 %v905_v53, 16  ;;  %v930_v3 = vshrl.u32 %v926_v46, 16 }
 0x1a2   : > { %v812_v48 = vor.u32 4788187, %v811_v41  ;;  %v919_v54 = vadd.s32 %v918_v50, %v908_v14  ;;  %v815_v12 = vcvt.s32.f32 %v808_v24  ;;  %v938_v29 = vsel %vm937_vm9, 1, %v1363_v16 }
 0x1a3   : > { %v940_v60 = vadd.s32 %v938_v29, %v936_v40  ;;  %v886_v22 = vsel %vm882_vm0, %v866_v30, %v1840_v59  ;;  %v888_v2 = vsel %vm884_vm1, %v1842_v20, %v887_v28  ;;  %v932_v11 = vshrl.u32 %v927_v4, 16 }
 0x1a4   : > { %v813_v49 = vand.u32 2147483647, %v812_v48  ;;  %v920_v0 = vadd.s32 %v919_v54, %v910_v1  ;;  %v939_v56 = vadd.s32 %v935_v26, %v931_v35  ;;  %vm697_vm10 = vcmp.lt.s32.totalorder %v1600_v33, 0 }
 0x1a5   : > { %v941_v55 = vadd.s32 %v940_v60, %v930_v3  ;;  %v889_v16 = vsel %vm883_vm2, %v886_v22, %v888_v2  ;;  %vm1909_vm11 = vcmp.le.f32.partialorder %v695_v31, 0.7853982  ;;  %v819_v20 = vsub.s32 4, %v1847_v38 }
 0x1a6   : > { %v816_v32 = vmul.f32 %v815_v12, %v813_v49  ;;  %vm945_vm12 = vc.u32 %v920_v0, %v939_v56  ;;  %v943_v5 = vmul.u32 %v1873_v15, %v889_v16  ;;  %vm838_vm1 = vweird.f32 %v1600_v33 }
 0x1a7   : > { %v942_v51 = vadd.s32 %v941_v55, %v932_v11  ;;  %v820_v31 = vsel %vm697_vm10, %v819_v20, %v1847_v38  ;;  %v333_v30 = vmax.f32 %v1494_v39, 0.0  ;;  %v944_v12 = vadd.s32 %v939_v56, %v920_v0 }
 0x1a8   : > { %v817_v23 = vxor.u32 2147483648, %v816_v32  ;;  %v822_v34 = vsel %vm1909_vm11, 0, %v820_v31  ;;  %vm852_vm3 = vcmp.lt.s32.totalorder %v1646_v61, 0  ;;  %vm851_vm4 = vcmp.le.f32.partialorder %v850_v27, 0.7853982 }
 0x1a9   : > { %v946_v53 = vadd.s32 1, %v942_v51  ;;  %v839_v58 = vadd.s32 3, %v822_v34  ;;  %vm993_vm8 = vweird.f32 %v1646_v61 }
 0x1aa   : > { %v818_v59 = vsel %vm697_vm10, %v817_v23, %v816_v32 }
 0x1ab   : > { %v821_v9 = vsel %vm1909_vm11, %v1600_v33, %v818_v59  ;;  %v947_v10 = vsel %vm945_vm12, %v946_v53, %v942_v51  ;;  %v840_v17 = vand.u32 3, %v839_v58 }
 0x1ac   : > { %v823_v37 = vmul.f32 %v821_v9, %v821_v9  ;;  %v948_v47 = vadd.s32 %v947_v10, %v943_v5 }
 0x1ad   : > { %vm842_vm14 = vcmp.eq.s32.totalorder %v840_v17, 0  ;;  %vm845_vm15 = vcmp.eq.s32.totalorder %v840_v17, 2  ;;  %vm841_vm0 = vcmp.lt.s32.totalorder %v840_v17, 2 }
 0x1ae   : > { %v824_v63 = vmul.f32 -0.001358992, %v823_v37  ;;  %v831_v13 = vmul.f32 -0.00019511016, %v823_v37  ;;  %v949_v46 = vadd.s32 536870912, %v948_v47 }
 0x1b0   : > { %v825_v19 = vadd.f32 0.041655596, %v824_v63  ;;  %v832_v6 = vadd.f32 0.008332121, %v831_v13  ;;  %v950_v62 = vshrl.u32 %v949_v46, 30 }
 0x1b2   : > { %v826_v21 = vmul.f32 %v825_v19, %v823_v37  ;;  %v833_v4 = vmul.f32 %v832_v6, %v823_v37  ;;  %v951_v52 = vshll.u32 %v950_v62, 30  ;;  %v974_v0 = vsub.s32 4, %v950_v62 }
 0x1b4   : > { %v827_v8 = vadd.f32 -0.4999988, %v826_v21  ;;  %v834_v45 = vadd.f32 -0.16666654, %v833_v4  ;;  %v952_v42 = vsub.s32 %v948_v47, %v951_v52  ;;  %v975_v53 = vsel %vm852_vm3, %v974_v0, %v950_v62 }
 0x1b5   : > { %v977_v10 = vsel %vm851_vm4, 0, %v975_v53  ;;  %v326_v62 = vadd.f32 %v1501_v44, %v1491_v36 }
 0x1b6   : > { %v828_v15 = vmul.f32 %v827_v8, %v823_v37  ;;  %v835_v43 = vmul.f32 %v834_v45, %v823_v37  ;;  %vm953_vm13 = vcmp.lt.s32.totalorder %v952_v42, 0  ;;  %v954_v38 = vsub.s32 0, %v952_v42 }
 0x1b7   : > { %v994_v19 = vadd.s32 3, %v977_v10 }
 0x1b8   : > { %v829_v57 = vadd.f32 1.0, %v828_v15  ;;  %v836_v14 = vadd.f32 1.0, %v835_v43  ;;  %v955_v18 = vsel %vm953_vm13, %v954_v38, %v952_v42 }
 0x1b9   : > { %v956_v25 = vclz %v955_v18  ;;  %v995_v21 = vand.u32 3, %v994_v19 }
 0x1ba   : > { %v837_v24 = vmul.f32 %v836_v14, %v821_v9  ;;  %v846_v41 = vxor.u32 2147483648, %v829_v57 }
 0x1bb   : > { %v1138_v35 = vadd.s32 4294967294, %v956_v25  ;;  %vm997_vm5 = vcmp.eq.s32.totalorder %v995_v21, 0  ;;  %vm1000_vm6 = vcmp.eq.s32.totalorder %v995_v21, 2  ;;  %vm996_vm7 = vcmp.lt.s32.totalorder %v995_v21, 2 }
 0x1bc   : > { %v843_v50 = vxor.u32 2147483648, %v837_v24  ;;  %v847_v40 = vsel %vm845_vm15, %v846_v41, %v837_v24 }
 0x1bd   : > { %vm1139_vm2 = vcmp.lt.s32.totalorder %v1138_v35, 0 }
 0x1be   : > { %v844_v26 = vsel %vm842_vm14, %v829_v57, %v843_v50  ;;  %v959_v54 = vsel %vm1139_vm2, 0, %v1138_v35 }
 0x1bf   : > { %v848_v48 = vsel %vm841_vm0, %v844_v26, %v847_v40  ;;  %v960_v1 = vsub.s32 32, %v959_v54  ;;  %v964_v29 = vsub.s32 4294967266, %v959_v54  ;;  %v961_v60 = vshll.u32 %v952_v42, %v959_v54 }
 0x1c0   : > { %v849_v28 = vsel %vm838_vm1, nan, %v848_v48  ;;  %v335_v42 = vmax.f32 %v326_v62, 0.0 }
 0x1c1   : > { %v1007_v49 = vmax.f32 %v849_v28, 0.0  ;;  %v962_v32 = vshrl.u32 %v944_v12, %v960_v1  ;;  %v965_v22 = vadd.s32 127, %v964_v29 }
 0x1c3   : > { %v1011_v3 = vadd.f32 %v1007_v49, %v333_v30  ;;  %v963_v11 = vor.u32 %v962_v32, %v961_v60  ;;  %v966_v55 = vshll.u32 %v965_v22, 23 }
 0x1c5   : > { %v1015_v2 = vmul.f32 0.5, %v1011_v3  ;;  %v967_v33 = vor.u32 4788187, %v966_v55  ;;  %v970_v16 = vcvt.s32.f32 %v963_v11 }
 0x1c7   : > { %1019 = vst [vmem:[%s1809_s15 + $0x10] sm:$0xff] %v1015_v2  ;;  %v968_v23 = vand.u32 2147483647, %v967_v33 }
 0x1c9   : > { %v971_v51 = vmul.f32 %v970_v16, %v968_v23 }
 0x1cb   : > { %v972_v7 = vxor.u32 2147483648, %v971_v51 }
 0x1cd   : > { %v973_v39 = vsel %vm852_vm3, %v972_v7, %v971_v51 }
 0x1ce   : > { %v976_v56 = vsel %vm851_vm4, %v1646_v61, %v973_v39 }
 0x1cf   : > { %v978_v59 = vmul.f32 %v976_v56, %v976_v56 }
 0x1d1   : > { %v979_v20 = vmul.f32 -0.001358992, %v978_v59  ;;  %v986_v9 = vmul.f32 -0.00019511016, %v978_v59 }
 0x1d3   : > { %v980_v37 = vadd.f32 0.041655596, %v979_v20  ;;  %v987_v5 = vadd.f32 0.008332121, %v986_v9 }
 0x1d5   : > { %v981_v63 = vmul.f32 %v980_v37, %v978_v59  ;;  %v988_v13 = vmul.f32 %v987_v5, %v978_v59 }
 0x1d7   : > { %v982_v47 = vadd.f32 -0.4999988, %v981_v63  ;;  %v989_v31 = vadd.f32 -0.16666654, %v988_v13 }
 0x1d9   : > { %v983_v6 = vmul.f32 %v982_v47, %v978_v59  ;;  %v990_v46 = vmul.f32 %v989_v31, %v978_v59 }
 0x1db   : > { %v984_v27 = vadd.f32 1.0, %v983_v6  ;;  %v991_v34 = vadd.f32 1.0, %v990_v46 }
 0x1dd   : > { %v992_v4 = vmul.f32 %v991_v34, %v976_v56  ;;  %v1001_v8 = vxor.u32 2147483648, %v984_v27 }
 0x1df   : > { %v998_v45 = vxor.u32 2147483648, %v992_v4  ;;  %v1002_v58 = vsel %vm1000_vm6, %v1001_v8, %v992_v4 }
 0x1e1   : > { %v999_v52 = vsel %vm997_vm5, %v984_v27, %v998_v45 }
 0x1e2   : > { %v1003_v15 = vsel %vm996_vm7, %v999_v52, %v1002_v58 }
 0x1e3   : > { %v1004_v43 = vsel %vm993_vm8, nan, %v1003_v15 }
 0x1e4   : > { %v1008_v57 = vmax.f32 %v1004_v43, 0.0 }
 0x1e6   : > { %v1012_v36 = vadd.f32 %v1008_v57, %v335_v42 }
 0x1e8   : > { %v1016_v44 = vmul.f32 0.5, %v1012_v36 }
 0x1ea   : > { %1020 = vst [vmem:[%s1809_s15 + $0x18] sm:$0xff] %v1016_v44 }
 0x1eb   : > { %1313 = shalt.err (!%p1310_p8)
}
 0x1ec   : > { %s1364_s13 = smov 128   ;;  %s1365_s14 = smov 8  }
 0x1ed   : > { %1198 = dma.vmem_to_hbm [thread:$0]  (%p1434_p5), %s1035_s22, 512, %s1037_s26, %s1022_s30, %s1364_s13, %s1364_s13, %s1365_s14  }
 0x1ee PF: > { %p1210_p9 = scmp.ge.s32.totalorder %s1352_s21, 2  ;;  %s1051_s15 = sand.u32 1, %s1340_s18  }
 0x1ef   : > { %s1052_s16 = scalar_lea.sflag [#allocation4], %s1051_s15 }
 0x1f0   : > { %p1205_p10 = pnand %p1210_p9, %p1438_p6 }
 0x1f2   : > { %p1206_p11 = pneg %p1205_p10 }
 0x1f4   : > { %1335 = dma.done.wait (%p1206_p11), %s1052_s16, 512  }
 0x1f5   : > { %1337 = vsyncadd (%p1206_p11), %s1052_s16, 4294966784  ;;  %p16_p12 = scmp.ge.s32.totalorder %s1421_s24, 4   ;;  %s1980_s18 = smov %s1344_s19 }
 0x1f6   : > { %s1981_s19 = smov %s1348_s20  ;;  %s1982_s20 = smov %s1432_s27 }
 0x1f7   : > { %s1983_s21 = smov %s1421_s24  ;;  %18 = sbr.rel (!%p16_p12) target bundleno = 4 (0x4), region = 80 }
 0x1fc   :  { %1058 = vsyncpa [#allocation3], 1 }
 0x1fd   :  { %1060 = vsyncpa [#allocation3 + $0x1], 1 }
 0x1fe   :  { %1061 = vsyncpa [#allocation4], 1 }
 0x1ff   :  { %1063 = vsyncpa [#allocation4 + $0x1], 1 }

// kernel: tpu_custom_call.1
= control target key start
LH: loop header
LB: loop body
LE: loop exit
PB: predicated region body
PF: predicated region fallthrough
CT: control target
= control target key end

     0   :  { %10 = vsyncpa [#allocation3], 0  ;;  %s1966_s0 = inlined_call_operand.vmem [shape: f32[64,16], index: 0, kind: input, shape index: {}]   ;;  %s1967_s1 = inlined_call_operand.vmem [shape: f32[16,256], index: 1, kind: input, shape index: {}]   ;;  %s1968_s2 = inlined_call_operand.vmem [shape: f32[1,256], index: 2, kind: input, shape index: {}]   ;;  %s1969_s3 = inlined_call_operand.hbm [shape: f32[128,128], index: 3, kind: input, shape index: {}]   ;;  %s1970_s4 = inlined_call_operand.vmem [shape: f32[1,128], index: 4, kind: input, shape index: {}]   ;;  %s1971_s5 = inlined_call_operand.hbm [shape: f32[64,128], index: 5, kind: output, shape index: {}]  }
   0x1   :  { %11 = vsyncpa [#allocation4], 0 }
   0x2   :  { %13 = vsyncpa [#allocation4 + $0x1], 0  ;;  %s1396_s18 = smov 0   ;;  %s1398_s19 = smov 0  }
   0x3   :  { %s1400_s20 = smov 0   ;;  %s1402_s21 = smov 0  }
   0x4 LB: > { %s1417_s22 = sadd.s32 4294967295, %s1352_s21   ;;  %s1111_s23 = sadd.s32 4294967294, %s1352_s21   ;;  %s1352_s21 = sphi %s1402_s21, %s1983_s21   ;;  %s1348_s20 = sphi %s1400_s20, %s1982_s20   ;;  %s1344_s19 = sphi %s1398_s19, %s1981_s19   ;;  %s1340_s18 = sphi %s1396_s18, %s1980_s18  }
   0x5   : > { %s1421_s24 = sadd.s32 1, %s1352_s21   ;;  %s136_s25 = sadd.s32 1, %s1348_s20 }
   0x6   : > { %s133_s26 = ssub.s32 %s1352_s21, %s1421_s24  ;;  %p146_p0 = scmp.ne.s32.totalorder %s1348_s20, %s1344_s19 }
   0x7   : > { %p134_p1 = scmp.eq.s32.totalorder %s133_s26, 0  ;;  %p147_p2 = scmp.eq.s32.totalorder %s1417_s22, 1 }
   0x8   : > { %p152_p3 = scmp.ne.s32.totalorder %s1344_s19, %s1340_s18  ;;  %p153_p4 = scmp.eq.s32.totalorder %s1111_s23, 1 }
   0x9   : > { %s1432_s27 = scalar_select %p134_p1, %s1348_s20, %s136_s25  }
   0xa   : > { %p1434_p5 = por %p147_p2, %p146_p0  ;;  %p1438_p6 = por %p153_p4, %p152_p3 }
   0xb   : > { %p1112_p7 = scmp.ge.s32.totalorder %s1352_s21, 1  ;;  %p160_p8 = scmp.lt.s32.totalorder %s1352_s21, 3 }
   0xc   : > { %p1208_p9 = scmp.eq.s32.totalorder %s1417_s22, 0  ;;  %s177_s7 = sshll.u32 %s1969_s3, 4  ;;  %s178_s7 = int_to_ptr.hbm [resolvable:$true] %s177_s7 }
   0xd   : > { %p161_p10 = pnand %p1112_p7, %p160_p8  ;;  %s1354_s8 = smov [#allocation2]  }
   0xe   : > { %s179_s9 = sshll.u32 %s1354_s8, 4  ;;  %s1355_s10 = smov 128   ;;  %s180_s9 = int_to_ptr.vmem [resolvable:$true] %s179_s9 }
   0xf   : > { %p1200_p11 = pneg %p161_p10  ;;  %s1356_s11 = smov 8  }
  0x10   : > { %207 = sbr.rel (%p161_p10) target bundleno = 494 (0x1ee), region = 40 }
  0x11   : > { %p1201_p12 = pnand %p1208_p9, %p1200_p11 }
  0x13   : > { %1203 = dma.hbm_to_vmem [thread:$0]  (!%p1201_p12), %s178_s7, 2048, %s180_s9, [#allocation3], %s1355_s10, %s1355_s10, %s1356_s11  }
  0x15   : > { %1331 = dma.done.wait (%p1208_p9), [#allocation3], 2048  }
  0x16   : > { %1333 = vsyncadd (%p1208_p9), [#allocation3], 4294965248  ;;  %s1118_s12 = sshll.u32 %s1417_s22, 2  ;;  %v249_v0 = vld [vmem:[%s1967_s1 + $0x10] sm:$0xff]  ;;  %v247_v1 = vld [vmem:[%s1967_s1] sm:$0xff]  ;;  %vm257_vm0 = vcmask 130048  }
  0x17   : > { %p237_p13 = scmp.lt.s32.totalorder %s1118_s12, 7  ;;  %284 = vmatpush.msra.mxu0 %v249_v0  ;;  %v351_v3 = vld [vmem:[#allocation2 + $0x78] sm:$0xff]  ;;  %v248_v5 = vld [vmem:[%s1967_s1 + $0x8] sm:$0xff]  ;;  %v350_v6 = vld [vmem:[#allocation2 + $0x70] sm:$0xff]  ;;  %s1306_s10 = scalar_lea.hbm %s1971_s5, 64 }
  0x18   : > { %v250_v4 = vld [vmem:[%s1967_s1 + $0x18] sm:$0xff]  ;;  %1147 = vmatpush.msra.mxu2 %v351_v3  ;;  %v349_v7 = vld [vmem:[#allocation2 + $0x68] sm:$0xff]  ;;  %v348_v8 = vld [vmem:[#allocation2 + $0x60] sm:$0xff]  ;;  %1148 = vmatpush.msra.mxu3 %v351_v3 }
  0x19   : > { %s1985_s12 = smov (!%p237_p13, %s1118_s12), 7  ;;  %285 = vmatpush.msra.mxu0 %v247_v1  ;;  %313 = vmatpush.msra.mxu1 %v250_v4  ;;  %v347_v10 = vld [vmem:[#allocation2 + $0x58] sm:$0xff]  ;;  %v346_v11 = vld [vmem:[#allocation2 + $0x50] sm:$0xff]  ;;  %v345_v12 = vld [vmem:[#allocation2 + $0x48] sm:$0xff]  ;;  %v1358_v4 = vmov 2475754826  }
  0x1a   : > { %s1119_s13 = sshll.u32 %s1985_s12, 3  ;;  %1150 = vmatpush.msra.mxu2 %v350_v6  ;;  %1151 = vmatpush.msra.mxu3 %v350_v6  ;;  %v344_v13 = vld [vmem:[#allocation2 + $0x40] sm:$0xff]  ;;  %v343_v15 = vld [vmem:[#allocation2 + $0x38] sm:$0xff]  ;;  %v342_v16 = vld [vmem:[#allocation2 + $0x30] sm:$0xff] }
  0x1b   : > { %s1458_s16 = scalar_lea.vmem %s1966_s0, %s1119_s13  ;;  %356 = vmatpush.msrb.mxu0 %v351_v3  ;;  %314 = vmatpush.msra.mxu1 %v248_v5  ;;  %v341_v17 = vld [vmem:[#allocation2 + $0x28] sm:$0xff]  ;;  %v340_v18 = vld [vmem:[#allocation2 + $0x20] sm:$0xff]  ;;  %v339_v20 = vld [vmem:[#allocation2 + $0x18] sm:$0xff]  ;;  %s233_s13 = sand.u32 1, %s1344_s19  }
  0x1c   : > { %v243_v2 = vld [vmem:[%s1458_s16] sm:$0xff]  ;;  %1153 = vmatpush.msra.mxu2 %v349_v7  ;;  %v244_v9 = vld [vmem:[%s1458_s16 + $0x8] sm:$0xff]  ;;  %1154 = vmatpush.msra.mxu3 %v349_v7  ;;  %v245_v14 = vld [vmem:[%s1458_s16 + $0x10] sm:$0xff]  ;;  %s1117_s14 = sshll.u32 %s233_s13, 5  ;;  %s1022_s30 = scalar_lea.sflag [#allocation4], %s233_s13 }
  0x1d   : > { %1120 = vmatmul.msk.f32.vlgmr.msra.gmra.mxu0 %vm257_vm0, %v243_v2  ;;  %1124 = vmatmul.msk.f32.vlgmr.msra.gmra.mxu1 %vm257_vm0, %v243_v2  ;;  %v246_v19 = vld [vmem:[%s1458_s16 + $0x18] sm:$0xff]  ;;  %v338_v21 = vld [vmem:[#allocation2 + $0x10] sm:$0xff]  ;;  %v337_v22 = vld [vmem:[#allocation2 + $0x8] sm:$0xff]  ;;  %v1357_v2 = vmov 683565275   ;;  %s1809_s15 = scalar_lea.vmem [#allocation5], %s1117_s14 }
  0x1e   : > { %357 = vmatpush.msrb.mxu0 %v350_v6  ;;  %1146 = vmatpush.msrb.mxu1 %v351_v3  ;;  %v336_v23 = vld [vmem:[#allocation2] sm:$0xff]  ;;  %s1145_s16 = sshll.u32 %s1417_s22, 5  ;;  %s1034_s22 = sshll.u32 %s1809_s15, 4  ;;  %s1035_s22 = int_to_ptr.vmem [resolvable:$true] %s1034_s22 }
  0x1f   : > { %1156 = vmatpush.msra.mxu2 %v348_v8  ;;  %1157 = vmatpush.msra.mxu3 %v348_v8  ;;  %v251_v24 = vld [vmem:[%s1968_s2] sm:$0x3]  ;;  %s1033_s25 = scalar_lea.hbm %s1971_s5, %s1145_s16 }
  0x20   : > { %358 = vmatpush.msrb.mxu0 %v349_v7  ;;  %1149 = vmatpush.msrb.mxu1 %v350_v6  ;;  %v253_v25 = vperm.slane %v251_v24, 0  ;;  %v1491_v36 = vperm.slane %v251_v24, 1  ;;  %v1499_v43 = vld [vmem:[%s1970_s4] ss:$0 sm:$0xff]  ;;  %s1036_s26 = sshll.u32 %s1033_s25, 4  ;;  %s1037_s26 = int_to_ptr.hbm [resolvable:$true] %s1036_s26 }
  0x21   : > { %1159 = vmatpush.msra.mxu2 %v347_v10  ;;  %1160 = vmatpush.msra.mxu3 %v347_v10  ;;  %s1300_s6 = sshra.s32 %s1037_s26, 4  ;;  %s1301_s6 = int_to_ptr.hbm [resolvable:$true] %s1300_s6 }
  0x22   : > { %359 = vmatpush.msrb.mxu0 %v348_v8  ;;  %1152 = vmatpush.msrb.mxu1 %v349_v7  ;;  %s1302_s7 = scalar_lea.hbm %s1301_s6, 32  ;;  %p1307_p3 = scmp.lt.s32.totalorder %s1301_s6, %s1971_s5 }
  0x23   : > { %1162 = vmatpush.msra.mxu2 %v346_v11  ;;  %1163 = vmatpush.msra.mxu3 %v346_v11  ;;  %p1303_p0 = scmp.ne.s32.totalorder %s1301_s6, %s1302_s7  ;;  %p1308_p4 = scmp.lt.s32.totalorder %s1306_s10, %s1302_s7 }
  0x24   : > { %360 = vmatpush.msrb.mxu0 %v347_v10  ;;  %1155 = vmatpush.msrb.mxu1 %v348_v8  ;;  %v1359_v8 = vmov 2131351028  }
  0x25   : > { %1121 = vmatmul.msk.f32.gmra.mxu0 %vm257_vm0, %v244_v9  ;;  %1125 = vmatmul.msk.f32.gmra.mxu1 %vm257_vm0, %v244_v9  ;;  %p1304_p1 = pnand %p1303_p0, %p1434_p5  ;;  %p1309_p7 = por %p1308_p4, %p1307_p3 }
  0x26   : > { %361 = vmatpush.msrb.mxu0 %v346_v11  ;;  %1158 = vmatpush.msrb.mxu1 %v347_v10 }
  0x27   : > { %1165 = vmatpush.msra.mxu2 %v345_v12  ;;  %1166 = vmatpush.msra.mxu3 %v345_v12  ;;  %p1305_p2 = pneg %p1304_p1 }
  0x28   : > { %362 = vmatpush.msrb.mxu0 %v345_v12  ;;  %1161 = vmatpush.msrb.mxu1 %v346_v11  ;;  %v1360_v11 = vmov 2102212464  }
  0x29   : > { %1168 = vmatpush.msra.mxu2 %v344_v13  ;;  %1169 = vmatpush.msra.mxu3 %v344_v13  ;;  %p1310_p8 = pnand %p1309_p7, %p1305_p2 }
  0x2a   : > { %363 = vmatpush.msrb.mxu0 %v344_v13  ;;  %1164 = vmatpush.msrb.mxu1 %v345_v12 }
  0x2b   : > { %1171 = vmatpush.msra.mxu2 %v343_v15  ;;  %1172 = vmatpush.msra.mxu3 %v343_v15 }
  0x2c   : > { %364 = vmatpush.msrb.mxu0 %v343_v15  ;;  %1167 = vmatpush.msrb.mxu1 %v344_v13 }
  0x2d   : > { %1122 = vmatmul.msk.f32.gmra.mxu0 %vm257_vm0, %v245_v14  ;;  %1126 = vmatmul.msk.f32.gmra.mxu1 %vm257_vm0, %v245_v14  ;;  %v1361_v14 = vmov 920167782  }
  0x2e   : > { %365 = vmatpush.msrb.mxu0 %v342_v16  ;;  %1170 = vmatpush.msrb.mxu1 %v343_v15 }
  0x2f   : > { %1174 = vmatpush.msra.mxu2 %v342_v16  ;;  %1175 = vmatpush.msra.mxu3 %v342_v16 }
  0x30   : > { %366 = vmatpush.msrb.mxu0 %v341_v17  ;;  %1173 = vmatpush.msrb.mxu1 %v342_v16 }
  0x31   : > { %1177 = vmatpush.msra.mxu2 %v341_v17  ;;  %1178 = vmatpush.msra.mxu3 %v341_v17 }
  0x32   : > { %367 = vmatpush.msrb.mxu0 %v340_v18  ;;  %1176 = vmatpush.msrb.mxu1 %v341_v17  ;;  %v1362_v17 = vmov 1326507024  }
  0x33   : > { %1180 = vmatpush.msra.mxu2 %v340_v18  ;;  %1181 = vmatpush.msra.mxu3 %v340_v18 }
  0x34   : > { %368 = vmatpush.msrb.mxu0 %v339_v20  ;;  %1179 = vmatpush.msrb.mxu1 %v340_v18 }
  0x35   : > { %1123 = vmatmul.msk.f32.gmra.mxu0 %vm257_vm0, %v246_v19  ;;  %1127 = vmatmul.msk.f32.gmra.mxu1 %vm257_vm0, %v246_v19 }
  0x36   : > { %1182 = vmatpush.msrb.mxu1 %v339_v20  ;;  %1183 = vmatpush.msra.mxu2 %v339_v20 }
  0x37   : > { %1184 = vmatpush.msra.mxu3 %v339_v20  ;;  %369 = vmatpush.msrb.mxu0 %v338_v21 }
  0x38   : > { %1185 = vmatpush.msrb.mxu1 %v338_v21  ;;  %1186 = vmatpush.msra.mxu2 %v338_v21 }
  0x39   : > { %1187 = vmatpush.msra.mxu3 %v338_v21  ;;  %370 = vmatpush.msrb.mxu0 %v337_v22 }
  0x3a   : > { %1188 = vmatpush.msrb.mxu1 %v337_v22  ;;  %1189 = vmatpush.msra.mxu2 %v337_v22 }
  0x3b   : > { %1190 = vmatpush.msra.mxu3 %v337_v22  ;;  %371 = vmatpush.msrb.mxu0 %v336_v23 }
  0x3c   : > { %1191 = vmatpush.msrb.mxu1 %v336_v23  ;;  %1192 = vmatpush.msra.mxu2 %v336_v23 }
  0x3d   : > { %1193 = vmatpush.msra.mxu3 %v336_v23 }
  0x9a   : > { %v287_v26 = vpop.f32.mrf.mxu0  ;;  %v1487_v28 = vpop.f32.mrf.mxu1 }
  0x9b   : > { %v288_v27 = vadd.f32 %v287_v26, %v253_v25 }
  0x9d   : > { %v328_v29 = vmax.f32 %v288_v27, 0.0 }
  0x9f   : > { %372 = vmatmul.f32.vlgmr.msrb.gmra.mxu0 %v328_v29 }
  0xa2   : > { %v290_v30 = vpop.f32.mrf.mxu0  ;;  %v1489_v32 = vpop.f32.mrf.mxu1 }
  0xa3   : > { %v291_v31 = vadd.f32 %v290_v30, %v253_v25 }
  0xa5   : > { %v330_v33 = vmax.f32 %v291_v31, 0.0 }
  0xa7   : > { %375 = vmatmul.f32.vlgmr.msrb.gmra.mxu1 %v330_v33 }
  0xaa   : > { %v293_v34 = vpop.f32.mrf.mxu0  ;;  %v322_v37 = vpop.f32.mrf.mxu1 }
  0xab   : > { %v294_v35 = vadd.f32 %v293_v34, %v253_v25  ;;  %v1494_v39 = vadd.f32 %v322_v37, %v1491_v36 }
  0xad   : > { %v332_v38 = vmax.f32 %v294_v35, 0.0 }
  0xaf   : > { %378 = vmatmul.f32.vlgmr.msra.gmra.mxu2 %v332_v38 }
  0xb2   : > { %v296_v40 = vpop.f32.mrf.mxu0  ;;  %v1501_v44 = vpop.f32.mrf.mxu1 }
  0xb3   : > { %v297_v41 = vadd.f32 %v296_v40, %v253_v25 }
  0xb5   : > { %v334_v42 = vmax.f32 %v297_v41, 0.0 }
  0xb7   : > { %381 = vmatmul.f32.vlgmr.msra.gmra.mxu3 %v334_v42 }
 0x11c   : > { %v373_v45 = vpop.f32.mrf.mxu0 }
 0x11d   : > { %v1504_v46 = vadd.f32 %v1499_v43, %v373_v45 }
 0x11f   : > { %v385_v47 = vand.u32 2147483647, %v1504_v46  ;;  %v388_v48 = vand.u32 2139095040, %v1504_v46 }
 0x121   : > { %v389_v49 = vshrl.u32 %v388_v48, 23  ;;  %v392_v50 = vand.u32 8388607, %v385_v47 }
 0x123   : > { %v1128_v51 = vadd.s32 4294967169, %v389_v49  ;;  %v393_v52 = vor.u32 8388608, %v392_v50 }
 0x124   : > { %v376_v53 = vpop.f32.mrf.mxu1 }
 0x125   : > { %v395_v54 = vadd.s32 1, %v1128_v51  ;;  %v1511_v55 = vadd.f32 %v1499_v43, %v376_v53  ;;  %v1513_v56 = vshll.u32 %v393_v52, 8 }
 0x127   : > { %vm396_vm1 = vcmp.gt.s32.totalorder %v395_v54, 0  ;;  %v540_v58 = vand.u32 2147483647, %v1511_v55  ;;  %v543_v59 = vand.u32 2139095040, %v1511_v55  ;;  %v434_v62 = vand.u32 65535, %v1513_v56 }
 0x128   : > { %v397_v57 = vsel %vm396_vm1, %v395_v54, 0  ;;  %v435_v63 = vshrl.u32 %v1513_v56, 16 }
 0x129   : > { %v399_v60 = vand.u32 31, %v397_v57  ;;  %v544_v0 = vshrl.u32 %v543_v59, 23  ;;  %v398_v1 = vshrl.u32 %v397_v57, 5  ;;  %v1523_v6 = vand.u32 8388607, %v540_v58 }
 0x12b   : > { %v400_v61 = vsub.s32 32, %v399_v60  ;;  %v402_v3 = vshll.u32 %v1357_v2, %v399_v60  ;;  %v405_v5 = vshll.u32 %v1358_v4, %v399_v60  ;;  %v408_v10 = vshll.u32 %v1359_v8, %v399_v60 }
 0x12c   : > { %v411_v13 = vshll.u32 %v1360_v11, %v399_v60  ;;  %v414_v16 = vshll.u32 %v1361_v14, %v399_v60  ;;  %v1131_v22 = vadd.s32 4294967169, %v544_v0  ;;  %vm417_vm2 = vcmp.lt.s32.totalorder %v398_v1, 1 }
 0x12d   : > { %v403_v7 = vshrl.u32 %v1358_v4, %v400_v61  ;;  %v406_v9 = vshrl.u32 %v1359_v8, %v400_v61  ;;  %v409_v12 = vshrl.u32 %v1360_v11, %v400_v61  ;;  %v412_v15 = vshrl.u32 %v1361_v14, %v400_v61 }
 0x12e   : > { %v415_v18 = vshrl.u32 %v1362_v17, %v400_v61  ;;  %vm420_vm3 = vcmp.lt.s32.totalorder %v398_v1, 4  ;;  %v401_v25 = vshrl.u32 %v1357_v2, %v400_v61  ;;  %vm419_vm4 = vcmp.lt.s32.totalorder %v398_v1, 3 }
 0x12f   : > { %v404_v19 = vor.u32 %v403_v7, %v402_v3  ;;  %v407_v20 = vor.u32 %v406_v9, %v405_v5  ;;  %v410_v21 = vor.u32 %v409_v12, %v408_v10  ;;  %v413_v23 = vor.u32 %v412_v15, %v411_v13 }
 0x130   : > { %v416_v24 = vor.u32 %v415_v18, %v414_v16  ;;  %v550_v33 = vadd.s32 1, %v1131_v22  ;;  %vm418_vm5 = vcmp.lt.s32.totalorder %v398_v1, 2  ;;  %v548_v50 = vor.u32 8388608, %v1523_v6 }
 0x131   : > { %v422_v26 = vsel %vm420_vm3, %v410_v21, 2102212464  ;;  %v425_v27 = vsel %vm417_vm2, %v404_v19, %v407_v20  ;;  %v429_v29 = vsel %vm417_vm2, %v407_v20, %v410_v21  ;;  %v426_v30 = vsel %vm420_vm3, %v413_v23, 920167782 }
 0x132   : > { %v430_v31 = vsel %vm420_vm3, %v416_v24, 1326507024  ;;  %v421_v34 = vsel %vm417_vm2, %v401_v25, %v404_v19  ;;  %v427_v35 = vsel %vm419_vm4, %v410_v21, %v426_v30  ;;  %v423_v38 = vsel %vm419_vm4, %v407_v20, %v422_v26 }
 0x133   : > { %v431_v37 = vsel %vm419_vm4, %v413_v23, %v430_v31  ;;  %v428_v40 = vsel %vm418_vm5, %v425_v27, %v427_v35  ;;  %vm551_vm6 = vcmp.gt.s32.totalorder %v550_v33, 0  ;;  %v1535_v51 = vsel %vm418_vm5, %v421_v34, %v423_v38 }
 0x134   : > { %v432_v41 = vsel %vm418_vm5, %v429_v29, %v431_v37  ;;  %v458_v48 = vand.u32 65535, %v428_v40  ;;  %v459_v49 = vshrl.u32 %v428_v40, 16  ;;  %v552_v54 = vsel %vm551_vm6, %v550_v33, 0 }
 0x135   : > { %v436_v42 = vand.u32 65535, %v432_v41  ;;  %v437_v45 = vshrl.u32 %v432_v41, 16  ;;  %v554_v15 = vand.u32 31, %v552_v54  ;;  %v1363_v16 = vmov 0  }
 0x136   : > { %v461_v60 = vmul.u32 %v459_v49, %v434_v62  ;;  %v462_v61 = vmul.u32 %v458_v48, %v435_v63  ;;  %v460_v3 = vmul.u32 %v458_v48, %v434_v62  ;;  %v463_v5 = vmul.u32 %v459_v49, %v435_v63 }
 0x137   : > { %v439_v52 = vmul.u32 %v437_v45, %v434_v62  ;;  %v440_v53 = vmul.u32 %v436_v42, %v435_v63  ;;  %v438_v57 = vmul.u32 %v436_v42, %v434_v62  ;;  %v441_v59 = vmul.u32 %v437_v45, %v435_v63 }
 0x138   : > { %v464_v10 = vshll.u32 %v461_v60, 16  ;;  %v465_v12 = vshrl.u32 %v461_v60, 16  ;;  %v466_v6 = vshll.u32 %v462_v61, 16  ;;  %v467_v19 = vshrl.u32 %v462_v61, 16 }
 0x139   : > { %v442_v0 = vshll.u32 %v439_v52, 16  ;;  %v443_v1 = vshrl.u32 %v439_v52, 16  ;;  %v444_v7 = vshll.u32 %v440_v53, 16  ;;  %v445_v9 = vshrl.u32 %v440_v53, 16 }
 0x13a   : > { %vm468_vm8 = vc.u32 %v460_v3, %v464_v10  ;;  %v470_v20 = vadd.s32 %v464_v10, %v460_v3  ;;  %v1539_v62 = vsub.s32 32, %v554_v15  ;;  %v1542_v24 = vshrl.u32 %v552_v54, 5 }
 0x13b   : > { %vm446_vm7 = vc.u32 %v438_v57, %v442_v0  ;;  %v448_v13 = vadd.s32 %v442_v0, %v438_v57  ;;  %v469_v22 = vsel %vm468_vm8, 1, %v1363_v16  ;;  %v557_v29 = vshll.u32 %v1357_v2, %v554_v15 }
 0x13c   : > { %v447_v18 = vsel %vm446_vm7, 1, %v1363_v16  ;;  %v471_v23 = vadd.s32 %v469_v22, %v463_v5  ;;  %vm472_vm10 = vc.u32 %v470_v20, %v466_v6  ;;  %v1545_v27 = vadd.s32 %v470_v20, %v466_v6 }
 0x13d   : > { %v449_v21 = vadd.s32 %v447_v18, %v441_v59  ;;  %vm450_vm9 = vc.u32 %v448_v13, %v444_v7  ;;  %v473_v26 = vsel %vm472_vm10, 1, %v1363_v16  ;;  %v558_v31 = vshrl.u32 %v1358_v4, %v1539_v62 }
 0x13e   : > { %v451_v63 = vsel %vm450_vm9, 1, %v1363_v16  ;;  %v475_v30 = vadd.s32 %v473_v26, %v471_v23  ;;  %v560_v33 = vshll.u32 %v1358_v4, %v554_v15  ;;  %v561_v34 = vshrl.u32 %v1359_v8, %v1539_v62 }
 0x13f   : > { %v453_v25 = vadd.s32 %v451_v63, %v449_v21  ;;  %v563_v37 = vshll.u32 %v1359_v8, %v554_v15  ;;  %v564_v38 = vshrl.u32 %v1360_v11, %v1539_v62  ;;  %v566_v40 = vshll.u32 %v1360_v11, %v554_v15  ;;  %v379_v63 = vpop.f32.mrf.mxu2 }
 0x140   : > { %v476_v41 = vadd.s32 %v475_v30, %v465_v12  ;;  %v1557_v42 = vor.u32 %v558_v31, %v557_v29  ;;  %v1559_v45 = vor.u32 %v561_v34, %v560_v33  ;;  %v567_v48 = vshrl.u32 %v1361_v14, %v1539_v62 }
 0x141   : > { %v454_v35 = vadd.s32 %v453_v25, %v443_v1  ;;  %v565_v52 = vor.u32 %v564_v38, %v563_v37  ;;  %v569_v53 = vshll.u32 %v1361_v14, %v554_v15  ;;  %v570_v54 = vshrl.u32 %v1362_v17, %v1539_v62 }
 0x142   : > { %v477_v57 = vadd.s32 %v476_v41, %v467_v19  ;;  %v568_v59 = vor.u32 %v567_v48, %v566_v40  ;;  %vm572_vm12 = vcmp.lt.s32.totalorder %v1542_v24, 1  ;;  %v1571_v61 = vshll.u32 %v548_v50, 8 }
 0x143   : > { %v1563_v49 = vadd.s32 %v454_v35, %v445_v9  ;;  %v571_v60 = vor.u32 %v570_v54, %v569_v53  ;;  %v478_v0 = vmul.u32 %v1513_v56, %v1535_v51  ;;  %vm575_vm13 = vcmp.lt.s32.totalorder %v1542_v24, 4 }
 0x144   : > { %v481_v1 = vadd.s32 1, %v477_v57  ;;  %v580_v3 = vsel %vm572_vm12, %v1557_v42, %v1559_v45  ;;  %vm574_vm14 = vcmp.lt.s32.totalorder %v1542_v24, 3  ;;  %v581_v5 = vsel %vm575_vm13, %v568_v59, 920167782 }
 0x145   : > { %vm480_vm11 = vc.u32 %v1563_v49, %v1545_v27  ;;  %v584_v50 = vsel %vm572_vm12, %v1559_v45, %v565_v52  ;;  %v585_v56 = vsel %vm575_vm13, %v571_v60, 1326507024  ;;  %vm573_vm15 = vcmp.lt.s32.totalorder %v1542_v24, 2 }
 0x146   : > { %v482_v51 = vsel %vm480_vm11, %v481_v1, %v477_v57  ;;  %v582_v7 = vsel %vm574_vm14, %v565_v52, %v581_v5  ;;  %v586_v9 = vsel %vm574_vm14, %v568_v59, %v585_v56  ;;  %v589_v6 = vand.u32 65535, %v1571_v61 }
 0x147   : > { %v483_v10 = vadd.s32 %v482_v51, %v478_v0  ;;  %v583_v12 = vsel %vm573_vm15, %v580_v3, %v582_v7  ;;  %v587_v13 = vsel %vm573_vm15, %v584_v50, %v586_v9  ;;  %v590_v15 = vshrl.u32 %v1571_v61, 16 }
 0x148   : > { %v591_v18 = vand.u32 65535, %v587_v13  ;;  %v592_v19 = vshrl.u32 %v587_v13, 16  ;;  %v614_v20 = vshrl.u32 %v583_v12, 16  ;;  %v613_v22 = vand.u32 65535, %v583_v12 }
 0x149   : > { %v484_v21 = vadd.s32 536870912, %v483_v10  ;;  %v1600_v33 = vadd.f32 %v1499_v43, %v379_v63  ;;  %v577_v54 = vsel %vm575_vm13, %v565_v52, 2102212464  ;;  %vm387_vm4 = vcmp.lt.s32.totalorder %v1504_v46, 0 }
 0x14a   : > { %v594_v23 = vmul.u32 %v592_v19, %v589_v6  ;;  %v595_v25 = vmul.u32 %v591_v18, %v590_v15  ;;  %v616_v29 = vmul.u32 %v614_v20, %v589_v6  ;;  %v593_v30 = vmul.u32 %v591_v18, %v589_v6 }
 0x14b   : > { %v485_v26 = vshrl.u32 %v484_v21, 30  ;;  %v596_v35 = vmul.u32 %v592_v19, %v590_v15  ;;  %v617_v37 = vmul.u32 %v613_v22, %v590_v15  ;;  %v615_v48 = vmul.u32 %v613_v22, %v589_v6 }
 0x14c   : > { %v597_v31 = vshll.u32 %v594_v23, 16  ;;  %v619_v38 = vshll.u32 %v616_v29, 16  ;;  %v599_v40 = vshll.u32 %v595_v25, 16  ;;  %v598_v57 = vshrl.u32 %v594_v23, 16 }
 0x14d   : > { %v486_v34 = vshll.u32 %v485_v26, 30  ;;  %v618_v0 = vmul.u32 %v614_v20, %v590_v15  ;;  %v621_v5 = vshll.u32 %v617_v37, 16  ;;  %v698_v7 = vand.u32 2139095040, %v1600_v33 }
 0x14e   : > { %vm601_vm0 = vc.u32 %v593_v30, %v597_v31  ;;  %v603_v41 = vadd.s32 %v597_v31, %v593_v30  ;;  %vm623_vm2 = vc.u32 %v615_v48, %v619_v38  ;;  %v625_v51 = vadd.s32 %v619_v38, %v615_v48 }
 0x14f   : > { %v487_v53 = vsub.s32 %v483_v10, %v486_v34  ;;  %v602_v59 = vsel %vm601_vm0, 1, %v1363_v16  ;;  %v624_v56 = vsel %vm623_vm2, 1, %v1363_v16  ;;  %v509_v52 = vsub.s32 4, %v485_v26 }
 0x150   : > { %v604_v60 = vadd.s32 %v602_v59, %v596_v35  ;;  %vm605_vm1 = vc.u32 %v603_v41, %v599_v40  ;;  %v556_v10 = vshrl.u32 %v1357_v2, %v1539_v62  ;;  %v626_v12 = vadd.s32 %v624_v56, %v618_v0 }
 0x151   : > { %vm488_vm3 = vcmp.lt.s32.totalorder %v487_v53, 0  ;;  %v489_v1 = vsub.s32 0, %v487_v53  ;;  %v606_v3 = vsel %vm605_vm1, 1, %v1363_v16  ;;  %vm627_vm5 = vc.u32 %v625_v51, %v621_v5 }
 0x152   : > { %v608_v50 = vadd.s32 %v606_v3, %v604_v60  ;;  %v576_v15 = vsel %vm572_vm12, %v556_v10, %v1557_v42  ;;  %v578_v18 = vsel %vm574_vm14, %v1559_v45, %v577_v54  ;;  %v600_v19 = vshrl.u32 %v595_v25, 16 }
 0x153   : > { %v490_v9 = vsel %vm488_vm3, %v489_v1, %v487_v53  ;;  %v628_v20 = vsel %vm627_vm5, 1, %v1363_v16  ;;  %v620_v22 = vshrl.u32 %v616_v29, 16  ;;  %v699_v63 = vshrl.u32 %v698_v7, 23  ;;  %v382_v7 = vpop.f32.mrf.mxu3 }
 0x154   : > { %v491_v13 = vclz %v490_v9  ;;  %v609_v6 = vadd.s32 %v608_v50, %v598_v57  ;;  %v630_v62 = vadd.s32 %v628_v20, %v626_v12  ;;  %vm1620_vm6 = vcmp.le.f32.partialorder %v385_v47, 0.7853982 }
 0x155   : > { %v510_v42 = vsel %vm387_vm4, %v509_v52, %v485_v26  ;;  %v695_v31 = vand.u32 2147483647, %v1600_v33  ;;  %v479_v45 = vadd.s32 %v1545_v27, %v1563_v49  ;;  %v622_v25 = vshrl.u32 %v617_v37, 16 }
 0x156   : > { %v1129_v21 = vadd.s32 4294967294, %v491_v13  ;;  %v610_v30 = vadd.s32 %v609_v6, %v600_v19  ;;  %v631_v29 = vadd.s32 %v630_v62, %v620_v22  ;;  %v579_v35 = vsel %vm573_vm15, %v576_v15, %v578_v18 }
 0x157   : > { %v629_v47 = vadd.s32 %v625_v51, %v621_v5  ;;  %v1134_v38 = vadd.s32 4294967169, %v699_v63  ;;  %v512_v26 = vsel %vm1620_vm6, 0, %v510_v42  ;;  %v702_v54 = vand.u32 8388607, %v695_v31 }
 0x158   : > { %vm1130_vm7 = vcmp.lt.s32.totalorder %v1129_v21, 0  ;;  %v632_v48 = vadd.s32 %v631_v29, %v622_v25  ;;  %v1637_v24 = vadd.f32 %v1487_v28, %v1491_v36  ;;  %v529_v60 = vadd.s32 3, %v512_v26 }
 0x159   : > { %v494_v34 = vsel %vm1130_vm7, 0, %v1129_v21  ;;  %vm635_vm8 = vc.u32 %v610_v30, %v629_v47  ;;  %v705_v27 = vadd.s32 1, %v1134_v38  ;;  %v633_v0 = vmul.u32 %v1571_v61, %v579_v35 }
 0x15a   : > { %v495_v40 = vsub.s32 32, %v494_v34  ;;  %v499_v41 = vsub.s32 4294967266, %v494_v34  ;;  %v496_v49 = vshll.u32 %v487_v53, %v494_v34  ;;  %v636_v59 = vadd.s32 1, %v632_v48 }
 0x15b   : > { %vm706_vm9 = vcmp.gt.s32.totalorder %v705_v27, 0  ;;  %v703_v53 = vor.u32 8388608, %v702_v54  ;;  %v329_v52 = vmax.f32 %v1637_v24, 0.0  ;;  %v1643_v6 = vand.u32 3, %v529_v60 }
 0x15c   : > { %v497_v37 = vshrl.u32 %v479_v45, %v495_v40  ;;  %v500_v57 = vadd.s32 127, %v499_v41  ;;  %v637_v5 = vsel %vm635_vm8, %v636_v59, %v632_v48  ;;  %v707_v50 = vsel %vm706_vm9, %v705_v27, 0 }
 0x15d   : > { %v638_v56 = vadd.s32 %v637_v5, %v633_v0  ;;  %v709_v51 = vand.u32 31, %v707_v50  ;;  %v1646_v61 = vadd.f32 %v1499_v43, %v382_v7  ;;  %v1648_v15 = vadd.s32 %v629_v47, %v610_v30 }
 0x15e   : > { %v498_v1 = vor.u32 %v497_v37, %v496_v49  ;;  %v501_v3 = vshll.u32 %v500_v57, 23  ;;  %v1659_v63 = vshll.u32 %v703_v53, 8  ;;  %v1666_v29 = vshrl.u32 %v707_v50, 5 }
 0x15f   : > { %v639_v10 = vadd.s32 536870912, %v638_v56  ;;  %v1641_v12 = vsub.s32 32, %v709_v51  ;;  %v712_v22 = vshll.u32 %v1357_v2, %v709_v51  ;;  %v715_v42 = vshll.u32 %v1358_v4, %v709_v51 }
 0x160   : > { %v502_v9 = vor.u32 4788187, %v501_v3  ;;  %v505_v13 = vcvt.s32.f32 %v498_v1  ;;  %v721_v45 = vshll.u32 %v1360_v11, %v709_v51  ;;  %v718_v34 = vshll.u32 %v1359_v8, %v709_v51 }
 0x161   : > { %v1650_v18 = vshrl.u32 %v639_v10, 30  ;;  %v713_v19 = vshrl.u32 %v1358_v4, %v1641_v12  ;;  %v716_v20 = vshrl.u32 %v1359_v8, %v1641_v12  ;;  %v722_v62 = vshrl.u32 %v1361_v14, %v1641_v12 }
 0x162   : > { %v503_v28 = vand.u32 2147483647, %v502_v9  ;;  %v719_v30 = vshrl.u32 %v1360_v11, %v1641_v12  ;;  %v725_v35 = vshrl.u32 %v1362_v17, %v1641_v12  ;;  %v724_v48 = vshll.u32 %v1361_v14, %v709_v51 }
 0x163   : > { %v641_v43 = vshll.u32 %v1650_v18, 30  ;;  %v1673_v38 = vor.u32 %v713_v19, %v712_v22  ;;  %v1675_v40 = vor.u32 %v716_v20, %v715_v42  ;;  %v723_v41 = vor.u32 %v722_v62, %v721_v45 }
 0x164   : > { %v506_v21 = vmul.f32 %v505_v13, %v503_v28  ;;  %v1681_v54 = vand.u32 65535, %v1659_v63  ;;  %v850_v27 = vand.u32 2147483647, %v1646_v61  ;;  %v1691_v57 = vor.u32 %v719_v30, %v718_v34 }
 0x165   : > { %v1671_v47 = vsub.s32 %v638_v56, %v641_v43  ;;  %vm542_vm11 = vcmp.lt.s32.totalorder %v1511_v55, 0  ;;  %vm727_vm12 = vcmp.lt.s32.totalorder %v1666_v29, 1  ;;  %vm730_vm13 = vcmp.lt.s32.totalorder %v1666_v29, 4 }
 0x166   : > { %v507_v25 = vxor.u32 2147483648, %v506_v21  ;;  %v1699_v60 = vshrl.u32 %v1659_v63, 16  ;;  %v726_v0 = vor.u32 %v725_v35, %v724_v48  ;;  %v735_v1 = vsel %vm727_vm12, %v1673_v38, %v1675_v40 }
 0x167   : > { %vm643_vm10 = vcmp.lt.s32.totalorder %v1671_v47, 0  ;;  %v644_v37 = vsub.s32 0, %v1671_v47  ;;  %v736_v3 = vsel %vm730_vm13, %v723_v41, 920167782  ;;  %vm729_vm14 = vcmp.lt.s32.totalorder %v1666_v29, 3 }
 0x168   : > { %v508_v26 = vsel %vm387_vm4, %v507_v25, %v506_v21  ;;  %vm728_vm15 = vcmp.lt.s32.totalorder %v1666_v29, 2  ;;  %v737_v51 = vsel %vm729_vm14, %v1691_v57, %v736_v3  ;;  %v853_v7 = vand.u32 2139095040, %v1646_v61 }
 0x169   : > { %v1687_v49 = vsel %vm1620_vm6, %v1504_v46, %v508_v26  ;;  %v645_v23 = vsel %vm643_vm10, %v644_v37, %v1671_v47  ;;  %v1716_v9 = vand.u32 8388607, %v850_v27  ;;  %v738_v13 = vsel %vm728_vm15, %v735_v1, %v737_v51 }
 0x16a   : > { %v513_v59 = vmul.f32 %v1687_v49, %v1687_v49  ;;  %v646_v56 = vclz %v645_v23  ;;  %v664_v19 = vsub.s32 4, %v1650_v18  ;;  %v739_v20 = vsel %vm727_vm12, %v1675_v40, %v1691_v57 }
 0x16b   : > { %v740_v21 = vsel %vm730_vm13, %v726_v0, 1326507024  ;;  %v769_v22 = vshrl.u32 %v738_v13, 16  ;;  %v1731_v45 = vshrl.u32 %v1357_v2, %v1641_v12  ;;  %v1735_v34 = vshrl.u32 %v853_v7, 23 }
 0x16c   : > { %v514_v5 = vmul.f32 -0.001358992, %v513_v59  ;;  %v521_v50 = vmul.f32 -0.00019511016, %v513_v59  ;;  %v1132_v28 = vadd.s32 4294967294, %v646_v56  ;;  %v741_v42 = vsel %vm729_vm14, %v723_v41, %v740_v21 }
 0x16d   : > { %v742_v25 = vsel %vm728_vm15, %v739_v20, %v741_v42  ;;  %v768_v37 = vand.u32 65535, %v738_v13  ;;  %vm532_vm1 = vcmp.eq.s32.totalorder %v1643_v6, 0  ;;  %vm535_vm2 = vcmp.eq.s32.totalorder %v1643_v6, 2 }
 0x16e   : > { %v515_v53 = vadd.f32 0.041655596, %v514_v5  ;;  %v522_v10 = vadd.f32 0.008332121, %v521_v50  ;;  %vm1133_vm0 = vcmp.lt.s32.totalorder %v1132_v28, 0  ;;  %v1742_v41 = vsel %vm542_vm11, %v664_v19, %v1650_v18 }
 0x16f   : > { %v649_v30 = vsel %vm1133_vm0, 0, %v1132_v28  ;;  %v746_v12 = vand.u32 65535, %v742_v25  ;;  %v747_v0 = vshrl.u32 %v742_v25, 16  ;;  %vm531_vm3 = vcmp.lt.s32.totalorder %v1643_v6, 2 }
 0x170   : > { %v516_v62 = vmul.f32 %v515_v53, %v513_v59  ;;  %v523_v43 = vmul.f32 %v522_v10, %v513_v59  ;;  %v650_v48 = vsub.s32 32, %v649_v30  ;;  %v654_v23 = vsub.s32 4294967266, %v649_v30 }
 0x171   : > { %v1747_v50 = vmul.u32 %v769_v22, %v1681_v54  ;;  %vm528_vm4 = vweird.f32 %v1504_v46  ;;  %v651_v56 = vshll.u32 %v1671_v47, %v649_v30  ;;  %v749_v7 = vmul.u32 %v747_v0, %v1681_v54 }
 0x172   : > { %v517_v35 = vadd.f32 -0.4999988, %v516_v62  ;;  %v524_v26 = vadd.f32 -0.16666654, %v523_v43  ;;  %v652_v5 = vshrl.u32 %v1648_v15, %v650_v48  ;;  %v655_v51 = vadd.s32 127, %v654_v23 }
 0x173   : > { %v750_v18 = vmul.u32 %v746_v12, %v1699_v60  ;;  %v1755_v28 = vmul.u32 %v768_v37, %v1699_v60  ;;  %vm1759_vm5 = vcmp.le.f32.partialorder %v540_v58, 0.7853982  ;;  %v748_v19 = vmul.u32 %v746_v12, %v1681_v54 }
 0x174   : > { %v518_v1 = vmul.f32 %v517_v35, %v513_v59  ;;  %v525_v3 = vmul.f32 %v524_v26, %v513_v59  ;;  %v770_v59 = vmul.u32 %v768_v37, %v1681_v54  ;;  %v653_v13 = vor.u32 %v652_v5, %v651_v56 }
 0x175   : > { %v656_v47 = vshll.u32 %v655_v51, 23  ;;  %v752_v20 = vshll.u32 %v749_v7, 16  ;;  %v751_v43 = vmul.u32 %v747_v0, %v1699_v60  ;;  %v754_v42 = vshll.u32 %v750_v18, 16 }
 0x176   : > { %v519_v53 = vadd.f32 1.0, %v518_v1  ;;  %v526_v10 = vadd.f32 1.0, %v525_v3  ;;  %v774_v58 = vshll.u32 %v1747_v50, 16  ;;  %v753_v26 = vshrl.u32 %v749_v7, 16 }
 0x177   : > { %v657_v30 = vor.u32 4788187, %v656_v47  ;;  %vm756_vm6 = vc.u32 %v748_v19, %v752_v20  ;;  %v758_v25 = vadd.s32 %v752_v20, %v748_v19  ;;  %v773_v37 = vmul.u32 %v769_v22, %v1699_v60 }
 0x178   : > { %v527_v21 = vmul.f32 %v526_v10, %v1687_v49  ;;  %v536_v62 = vxor.u32 2147483648, %v519_v53  ;;  %v757_v48 = vsel %vm756_vm6, 1, %v1363_v16  ;;  %v660_v23 = vcvt.s32.f32 %v653_v13 }
 0x179   : > { %v658_v54 = vand.u32 2147483647, %v657_v30  ;;  %v759_v49 = vadd.s32 %v757_v48, %v751_v43  ;;  %vm760_vm7 = vc.u32 %v758_v25, %v754_v42  ;;  %vm778_vm8 = vc.u32 %v770_v59, %v774_v58 }
 0x17a   : > { %v533_v35 = vxor.u32 2147483648, %v527_v21  ;;  %v537_v0 = vsel %vm535_vm2, %v536_v62, %v527_v21  ;;  %v761_v1 = vsel %vm760_vm7, 1, %v1363_v16  ;;  %v779_v22 = vsel %vm778_vm8, 1, %v1363_v16 }
 0x17b   : > { %v661_v5 = vmul.f32 %v660_v23, %v658_v54  ;;  %v763_v60 = vadd.s32 %v761_v1, %v759_v49  ;;  %v776_v51 = vshll.u32 %v1755_v28, 16  ;;  %v780_v7 = vadd.s32 %v774_v58, %v770_v59 }
 0x17c   : > { %v534_v12 = vsel %vm532_vm1, %v519_v53, %v533_v35  ;;  %v781_v53 = vadd.s32 %v779_v22, %v773_v37  ;;  %v1137_v19 = vadd.s32 4294967169, %v1735_v34  ;;  %v667_v6 = vsel %vm1759_vm5, 0, %v1742_v41 }
 0x17d   : > { %v538_v3 = vsel %vm531_vm3, %v534_v12, %v537_v0  ;;  %v662_v13 = vxor.u32 2147483648, %v661_v5  ;;  %v764_v47 = vadd.s32 %v763_v60, %v753_v26  ;;  %v731_v46 = vsel %vm727_vm12, %v1731_v45, %v1673_v38 }
 0x17e   : > { %v539_v56 = vsel %vm528_vm4, nan, %v538_v3  ;;  %v732_v59 = vsel %vm730_vm13, %v1691_v57, 2102212464  ;;  %vm782_vm9 = vc.u32 %v780_v7, %v776_v51  ;;  %v755_v21 = vshrl.u32 %v750_v18, 16 }
 0x17f   : > { %v1005_v10 = vmax.f32 %v539_v56, 0.0  ;;  %v663_v34 = vsel %vm542_vm11, %v662_v13, %v661_v5  ;;  %v783_v62 = vsel %vm782_vm9, 1, %v1363_v16  ;;  %v775_v38 = vshrl.u32 %v1747_v50, 16 }
 0x180   : > { %v666_v41 = vsel %vm1759_vm5, %v1511_v55, %v663_v34  ;;  %v785_v45 = vadd.s32 %v783_v62, %v781_v53  ;;  %v860_v43 = vadd.s32 1, %v1137_v19  ;;  %v733_v24 = vsel %vm729_vm14, %v1675_v40, %v732_v59 }
 0x181   : > { %v1009_v20 = vadd.f32 %v1005_v10, %v329_v52  ;;  %v668_v57 = vmul.f32 %v666_v41, %v666_v41  ;;  %v1806_v52 = vadd.s32 %v764_v47, %v755_v21  ;;  %v684_v30 = vadd.s32 3, %v667_v6 }
 0x182   : > { %v777_v18 = vshrl.u32 %v1755_v28, 16  ;;  %v786_v25 = vadd.s32 %v785_v45, %v775_v38  ;;  %vm861_vm10 = vcmp.gt.s32.totalorder %v860_v43, 0  ;;  %v1812_v58 = vadd.s32 %v780_v7, %v776_v51 }
 0x183   : > { %v1013_v42 = vmul.f32 0.5, %v1009_v20  ;;  %v669_v50 = vmul.f32 -0.001358992, %v668_v57  ;;  %v676_v15 = vmul.f32 -0.00019511016, %v668_v57  ;;  %v862_v35 = vsel %vm861_vm10, %v860_v43, 0 }
 0x184   : > { %v734_v26 = vsel %vm728_vm15, %v731_v46, %v733_v24  ;;  %v787_v40 = vadd.s32 %v786_v25, %v777_v18  ;;  %v864_v48 = vand.u32 31, %v862_v35  ;;  %v1818_v37 = vadd.f32 %v1489_v32, %v1491_v36 }
 0x185   : > { %1017 = vst [vmem:[%s1809_s15] sm:$0xff] %v1013_v42  ;;  %v670_v28 = vadd.f32 0.041655596, %v669_v50  ;;  %v677_v54 = vadd.f32 0.008332121, %v676_v15  ;;  %vm790_vm11 = vc.u32 %v1806_v52, %v1812_v58  ;;  %v685_v23 = vand.u32 3, %v684_v30 }
 0x186   : > { %v791_v49 = vadd.s32 1, %v787_v40  ;;  %v858_v12 = vor.u32 8388608, %v1716_v9  ;;  %v1823_v0 = vsub.s32 32, %v864_v48  ;;  %v788_v3 = vmul.u32 %v1659_v63, %v734_v26 }
 0x187   : > { %v671_v1 = vmul.f32 %v670_v28, %v668_v57  ;;  %v678_v29 = vmul.f32 %v677_v54, %v668_v57  ;;  %v1826_v5 = vshrl.u32 %v862_v35, 5  ;;  %v867_v32 = vshll.u32 %v1357_v2, %v864_v48 }
 0x188   : > { %v792_v60 = vsel %vm790_vm11, %v791_v49, %v787_v40  ;;  %v868_v22 = vshrl.u32 %v1358_v4, %v1823_v0  ;;  %v871_v56 = vshrl.u32 %v1359_v8, %v1823_v0  ;;  %v874_v53 = vshrl.u32 %v1360_v11, %v1823_v0 }
 0x189   : > { %v672_v51 = vadd.f32 -0.4999988, %v671_v1  ;;  %v679_v7 = vadd.f32 -0.16666654, %v678_v29  ;;  %v793_v9 = vadd.s32 %v792_v60, %v788_v3  ;;  %v870_v10 = vshll.u32 %v1358_v4, %v864_v48 }
 0x18a   : > { %v873_v63 = vshll.u32 %v1359_v8, %v864_v48  ;;  %v876_v13 = vshll.u32 %v1360_v11, %v864_v48  ;;  %v877_v47 = vshrl.u32 %v1361_v14, %v1823_v0  ;;  %v1840_v59 = vor.u32 %v868_v22, %v867_v32 }
 0x18b   : > { %v673_v19 = vmul.f32 %v672_v51, %v668_v57  ;;  %v680_v6 = vmul.f32 %v679_v7, %v668_v57  ;;  %v794_v46 = vadd.s32 536870912, %v793_v9  ;;  %v1842_v20 = vor.u32 %v871_v56, %v870_v10 }
 0x18c   : > { %v878_v34 = vor.u32 %v877_v47, %v876_v13  ;;  %v879_v21 = vshll.u32 %v1361_v14, %v864_v48  ;;  %v880_v4 = vshrl.u32 %v1362_v17, %v1823_v0  ;;  %v1849_v11 = vor.u32 %v874_v53, %v873_v63 }
 0x18d   : > { %v674_v62 = vadd.f32 1.0, %v673_v19  ;;  %v681_v8 = vadd.f32 1.0, %v680_v6  ;;  %v1847_v38 = vshrl.u32 %v794_v46, 30  ;;  %vm686_vm12 = vcmp.lt.s32.totalorder %v685_v23, 2 }
 0x18e   : > { %vm687_vm13 = vcmp.eq.s32.totalorder %v685_v23, 0  ;;  %vm690_vm14 = vcmp.eq.s32.totalorder %v685_v23, 2  ;;  %v881_v45 = vor.u32 %v880_v4, %v879_v21  ;;  %vm885_vm15 = vcmp.lt.s32.totalorder %v1826_v5, 4 }
 0x18f   : > { %v682_v43 = vmul.f32 %v681_v8, %v666_v41  ;;  %v691_v42 = vxor.u32 2147483648, %v674_v62  ;;  %v796_v57 = vshll.u32 %v1847_v38, 30  ;;  %vm882_vm0 = vcmp.lt.s32.totalorder %v1826_v5, 1 }
 0x190   : > { %vm884_vm1 = vcmp.lt.s32.totalorder %v1826_v5, 3  ;;  %v891_v14 = vsel %vm885_vm15, %v878_v34, 920167782  ;;  %v895_v17 = vsel %vm885_vm15, %v881_v45, 1326507024  ;;  %v890_v41 = vsel %vm882_vm0, %v1840_v59, %v1842_v20 }
 0x191   : > { %v688_v24 = vxor.u32 2147483648, %v682_v43  ;;  %v797_v30 = vsub.s32 %v793_v9, %v796_v57  ;;  %v894_v18 = vsel %vm882_vm0, %v1842_v20, %v1849_v11  ;;  %vm883_vm2 = vcmp.lt.s32.totalorder %v1826_v5, 2 }
 0x192   : > { %v892_v25 = vsel %vm884_vm1, %v1849_v11, %v891_v14  ;;  %v896_v50 = vsel %vm884_vm1, %v878_v34, %v895_v17  ;;  %v1873_v15 = vshll.u32 %v858_v12, 8  ;;  %v692_v26 = vsel %vm690_vm14, %v691_v42, %v682_v43 }
 0x193   : > { %v689_v35 = vsel %vm687_vm13, %v674_v62, %v688_v24  ;;  %vm798_vm3 = vcmp.lt.s32.totalorder %v797_v30, 0  ;;  %v799_v40 = vsub.s32 0, %v797_v30  ;;  %vm683_vm4 = vweird.f32 %v1511_v55 }
 0x194   : > { %v693_v48 = vsel %vm686_vm12, %v689_v35, %v692_v26  ;;  %v893_v28 = vsel %vm883_vm2, %v890_v41, %v892_v25  ;;  %v897_v54 = vsel %vm883_vm2, %v894_v18, %v896_v50  ;;  %v331_v49 = vmax.f32 %v1818_v37, 0.0 }
 0x195   : > { %v694_v12 = vsel %vm683_vm4, nan, %v693_v48  ;;  %v800_v1 = vsel %vm798_vm3, %v799_v40, %v797_v30  ;;  %v901_v29 = vand.u32 65535, %v897_v54  ;;  %v899_v32 = vand.u32 65535, %v1873_v15 }
 0x196   : > { %v1006_v3 = vmax.f32 %v694_v12, 0.0  ;;  %v801_v60 = vclz %v800_v1  ;;  %v902_v22 = vshrl.u32 %v897_v54, 16  ;;  %v900_v55 = vshrl.u32 %v1873_v15, 16 }
 0x197   : > { %v923_v23 = vand.u32 65535, %v893_v28  ;;  %v789_v9 = vadd.s32 %v1812_v58, %v1806_v52  ;;  %v924_v37 = vshrl.u32 %v893_v28, 16  ;;  %v903_v63 = vmul.u32 %v901_v29, %v899_v32 }
 0x198   : > { %v1010_v56 = vadd.f32 %v1006_v3, %v331_v49  ;;  %v1135_v51 = vadd.s32 4294967294, %v801_v60  ;;  %v904_v7 = vmul.u32 %v902_v22, %v899_v32  ;;  %v905_v53 = vmul.u32 %v901_v29, %v900_v55 }
 0x199   : > { %v906_v19 = vmul.u32 %v902_v22, %v900_v55  ;;  %v925_v6 = vmul.u32 %v923_v23, %v899_v32  ;;  %v926_v46 = vmul.u32 %v924_v37, %v899_v32  ;;  %v927_v4 = vmul.u32 %v923_v23, %v900_v55 }
 0x19a   : > { %v1014_v10 = vmul.f32 0.5, %v1010_v56  ;;  %vm1136_vm5 = vcmp.lt.s32.totalorder %v1135_v51, 0  ;;  %v907_v13 = vshll.u32 %v904_v7, 16  ;;  %v909_v62 = vshll.u32 %v905_v53, 16 }
 0x19b   : > { %v804_v47 = vsel %vm1136_vm5, 0, %v1135_v51  ;;  %v929_v52 = vshll.u32 %v926_v46, 16  ;;  %v908_v14 = vshrl.u32 %v904_v7, 16  ;;  %v928_v17 = vmul.u32 %v924_v37, %v900_v55 }
 0x19c   : > { %1018 = vst [vmem:[%s1809_s15 + $0x8] sm:$0xff] %v1014_v10  ;;  %v805_v34 = vsub.s32 32, %v804_v47  ;;  %v809_v21 = vsub.s32 4294967266, %v804_v47  ;;  %vm911_vm6 = vc.u32 %v903_v63, %v907_v13  ;;  %v913_v45 = vadd.s32 %v907_v13, %v903_v63 }
 0x19d   : > { %v912_v8 = vsel %vm911_vm6, 1, %v1363_v16  ;;  %v806_v58 = vshll.u32 %v797_v30, %v804_v47  ;;  %vm933_vm8 = vc.u32 %v925_v6, %v929_v52  ;;  %v931_v35 = vshll.u32 %v927_v4, 16 }
 0x19e   : > { %v807_v43 = vshrl.u32 %v789_v9, %v805_v34  ;;  %v810_v42 = vadd.s32 127, %v809_v21  ;;  %v914_v57 = vadd.s32 %v912_v8, %v906_v19  ;;  %vm915_vm7 = vc.u32 %v913_v45, %v909_v62 }
 0x19f   : > { %v916_v18 = vsel %vm915_vm7, 1, %v1363_v16  ;;  %v934_v25 = vsel %vm933_vm8, 1, %v1363_v16  ;;  %v935_v26 = vadd.s32 %v929_v52, %v925_v6  ;;  %v866_v30 = vshrl.u32 %v1357_v2, %v1823_v0 }
 0x1a0   : > { %v808_v24 = vor.u32 %v807_v43, %v806_v58  ;;  %v811_v41 = vshll.u32 %v810_v42, 23  ;;  %v918_v50 = vadd.s32 %v916_v18, %v914_v57  ;;  %v936_v40 = vadd.s32 %v934_v25, %v928_v17 }
 0x1a1   : > { %v887_v28 = vsel %vm885_vm15, %v1849_v11, 2102212464  ;;  %vm937_vm9 = vc.u32 %v935_v26, %v931_v35  ;;  %v910_v1 = vshrl.u32 %v905_v53, 16  ;;  %v930_v3 = vshrl.u32 %v926_v46, 16 }
 0x1a2   : > { %v812_v48 = vor.u32 4788187, %v811_v41  ;;  %v919_v54 = vadd.s32 %v918_v50, %v908_v14  ;;  %v815_v12 = vcvt.s32.f32 %v808_v24  ;;  %v938_v29 = vsel %vm937_vm9, 1, %v1363_v16 }
 0x1a3   : > { %v940_v60 = vadd.s32 %v938_v29, %v936_v40  ;;  %v886_v22 = vsel %vm882_vm0, %v866_v30, %v1840_v59  ;;  %v888_v2 = vsel %vm884_vm1, %v1842_v20, %v887_v28  ;;  %v932_v11 = vshrl.u32 %v927_v4, 16 }
 0x1a4   : > { %v813_v49 = vand.u32 2147483647, %v812_v48  ;;  %v920_v0 = vadd.s32 %v919_v54, %v910_v1  ;;  %v939_v56 = vadd.s32 %v935_v26, %v931_v35  ;;  %vm697_vm10 = vcmp.lt.s32.totalorder %v1600_v33, 0 }
 0x1a5   : > { %v941_v55 = vadd.s32 %v940_v60, %v930_v3  ;;  %v889_v16 = vsel %vm883_vm2, %v886_v22, %v888_v2  ;;  %vm1909_vm11 = vcmp.le.f32.partialorder %v695_v31, 0.7853982  ;;  %v819_v20 = vsub.s32 4, %v1847_v38 }
 0x1a6   : > { %v816_v32 = vmul.f32 %v815_v12, %v813_v49  ;;  %vm945_vm12 = vc.u32 %v920_v0, %v939_v56  ;;  %v943_v5 = vmul.u32 %v1873_v15, %v889_v16  ;;  %vm838_vm1 = vweird.f32 %v1600_v33 }
 0x1a7   : > { %v942_v51 = vadd.s32 %v941_v55, %v932_v11  ;;  %v820_v31 = vsel %vm697_vm10, %v819_v20, %v1847_v38  ;;  %v333_v30 = vmax.f32 %v1494_v39, 0.0  ;;  %v944_v12 = vadd.s32 %v939_v56, %v920_v0 }
 0x1a8   : > { %v817_v23 = vxor.u32 2147483648, %v816_v32  ;;  %v822_v34 = vsel %vm1909_vm11, 0, %v820_v31  ;;  %vm852_vm3 = vcmp.lt.s32.totalorder %v1646_v61, 0  ;;  %vm851_vm4 = vcmp.le.f32.partialorder %v850_v27, 0.7853982 }
 0x1a9   : > { %v946_v53 = vadd.s32 1, %v942_v51  ;;  %v839_v58 = vadd.s32 3, %v822_v34  ;;  %vm993_vm8 = vweird.f32 %v1646_v61 }
 0x1aa   : > { %v818_v59 = vsel %vm697_vm10, %v817_v23, %v816_v32 }
 0x1ab   : > { %v821_v9 = vsel %vm1909_vm11, %v1600_v33, %v818_v59  ;;  %v947_v10 = vsel %vm945_vm12, %v946_v53, %v942_v51  ;;  %v840_v17 = vand.u32 3, %v839_v58 }
 0x1ac   : > { %v823_v37 = vmul.f32 %v821_v9, %v821_v9  ;;  %v948_v47 = vadd.s32 %v947_v10, %v943_v5 }
 0x1ad   : > { %vm842_vm14 = vcmp.eq.s32.totalorder %v840_v17, 0  ;;  %vm845_vm15 = vcmp.eq.s32.totalorder %v840_v17, 2  ;;  %vm841_vm0 = vcmp.lt.s32.totalorder %v840_v17, 2 }
 0x1ae   : > { %v824_v63 = vmul.f32 -0.001358992, %v823_v37  ;;  %v831_v13 = vmul.f32 -0.00019511016, %v823_v37  ;;  %v949_v46 = vadd.s32 536870912, %v948_v47 }
 0x1b0   : > { %v825_v19 = vadd.f32 0.041655596, %v824_v63  ;;  %v832_v6 = vadd.f32 0.008332121, %v831_v13  ;;  %v950_v62 = vshrl.u32 %v949_v46, 30 }
 0x1b2   : > { %v826_v21 = vmul.f32 %v825_v19, %v823_v37  ;;  %v833_v4 = vmul.f32 %v832_v6, %v823_v37  ;;  %v951_v52 = vshll.u32 %v950_v62, 30  ;;  %v974_v0 = vsub.s32 4, %v950_v62 }
 0x1b4   : > { %v827_v8 = vadd.f32 -0.4999988, %v826_v21  ;;  %v834_v45 = vadd.f32 -0.16666654, %v833_v4  ;;  %v952_v42 = vsub.s32 %v948_v47, %v951_v52  ;;  %v975_v53 = vsel %vm852_vm3, %v974_v0, %v950_v62 }
 0x1b5   : > { %v977_v10 = vsel %vm851_vm4, 0, %v975_v53  ;;  %v326_v62 = vadd.f32 %v1501_v44, %v1491_v36 }
 0x1b6   : > { %v828_v15 = vmul.f32 %v827_v8, %v823_v37  ;;  %v835_v43 = vmul.f32 %v834_v45, %v823_v37  ;;  %vm953_vm13 = vcmp.lt.s32.totalorder %v952_v42, 0  ;;  %v954_v38 = vsub.s32 0, %v952_v42 }
 0x1b7   : > { %v994_v19 = vadd.s32 3, %v977_v10 }
 0x1b8   : > { %v829_v57 = vadd.f32 1.0, %v828_v15  ;;  %v836_v14 = vadd.f32 1.0, %v835_v43  ;;  %v955_v18 = vsel %vm953_vm13, %v954_v38, %v952_v42 }
 0x1b9   : > { %v956_v25 = vclz %v955_v18  ;;  %v995_v21 = vand.u32 3, %v994_v19 }
 0x1ba   : > { %v837_v24 = vmul.f32 %v836_v14, %v821_v9  ;;  %v846_v41 = vxor.u32 2147483648, %v829_v57 }
 0x1bb   : > { %v1138_v35 = vadd.s32 4294967294, %v956_v25  ;;  %vm997_vm5 = vcmp.eq.s32.totalorder %v995_v21, 0  ;;  %vm1000_vm6 = vcmp.eq.s32.totalorder %v995_v21, 2  ;;  %vm996_vm7 = vcmp.lt.s32.totalorder %v995_v21, 2 }
 0x1bc   : > { %v843_v50 = vxor.u32 2147483648, %v837_v24  ;;  %v847_v40 = vsel %vm845_vm15, %v846_v41, %v837_v24 }
 0x1bd   : > { %vm1139_vm2 = vcmp.lt.s32.totalorder %v1138_v35, 0 }
 0x1be   : > { %v844_v26 = vsel %vm842_vm14, %v829_v57, %v843_v50  ;;  %v959_v54 = vsel %vm1139_vm2, 0, %v1138_v35 }
 0x1bf   : > { %v848_v48 = vsel %vm841_vm0, %v844_v26, %v847_v40  ;;  %v960_v1 = vsub.s32 32, %v959_v54  ;;  %v964_v29 = vsub.s32 4294967266, %v959_v54  ;;  %v961_v60 = vshll.u32 %v952_v42, %v959_v54 }
 0x1c0   : > { %v849_v28 = vsel %vm838_vm1, nan, %v848_v48  ;;  %v335_v42 = vmax.f32 %v326_v62, 0.0 }
 0x1c1   : > { %v1007_v49 = vmax.f32 %v849_v28, 0.0  ;;  %v962_v32 = vshrl.u32 %v944_v12, %v960_v1  ;;  %v965_v22 = vadd.s32 127, %v964_v29 }
 0x1c3   : > { %v1011_v3 = vadd.f32 %v1007_v49, %v333_v30  ;;  %v963_v11 = vor.u32 %v962_v32, %v961_v60  ;;  %v966_v55 = vshll.u32 %v965_v22, 23 }
 0x1c5   : > { %v1015_v2 = vmul.f32 0.5, %v1011_v3  ;;  %v967_v33 = vor.u32 4788187, %v966_v55  ;;  %v970_v16 = vcvt.s32.f32 %v963_v11 }
 0x1c7   : > { %1019 = vst [vmem:[%s1809_s15 + $0x10] sm:$0xff] %v1015_v2  ;;  %v968_v23 = vand.u32 2147483647, %v967_v33 }
 0x1c9   : > { %v971_v51 = vmul.f32 %v970_v16, %v968_v23 }
 0x1cb   : > { %v972_v7 = vxor.u32 2147483648, %v971_v51 }
 0x1cd   : > { %v973_v39 = vsel %vm852_vm3, %v972_v7, %v971_v51 }
 0x1ce   : > { %v976_v56 = vsel %vm851_vm4, %v1646_v61, %v973_v39 }
 0x1cf   : > { %v978_v59 = vmul.f32 %v976_v56, %v976_v56 }
 0x1d1   : > { %v979_v20 = vmul.f32 -0.001358992, %v978_v59  ;;  %v986_v9 = vmul.f32 -0.00019511016, %v978_v59 }
 0x1d3   : > { %v980_v37 = vadd.f32 0.041655596, %v979_v20  ;;  %v987_v5 = vadd.f32 0.008332121, %v986_v9 }
 0x1d5   : > { %v981_v63 = vmul.f32 %v980_v37, %v978_v59  ;;  %v988_v13 = vmul.f32 %v987_v5, %v978_v59 }
 0x1d7   : > { %v982_v47 = vadd.f32 -0.4999988, %v981_v63  ;;  %v989_v31 = vadd.f32 -0.16666654, %v988_v13 }
 0x1d9   : > { %v983_v6 = vmul.f32 %v982_v47, %v978_v59  ;;  %v990_v46 = vmul.f32 %v989_v31, %v978_v59 }
 0x1db   : > { %v984_v27 = vadd.f32 1.0, %v983_v6  ;;  %v991_v34 = vadd.f32 1.0, %v990_v46 }
 0x1dd   : > { %v992_v4 = vmul.f32 %v991_v34, %v976_v56  ;;  %v1001_v8 = vxor.u32 2147483648, %v984_v27 }
 0x1df   : > { %v998_v45 = vxor.u32 2147483648, %v992_v4  ;;  %v1002_v58 = vsel %vm1000_vm6, %v1001_v8, %v992_v4 }
 0x1e1   : > { %v999_v52 = vsel %vm997_vm5, %v984_v27, %v998_v45 }
 0x1e2   : > { %v1003_v15 = vsel %vm996_vm7, %v999_v52, %v1002_v58 }
 0x1e3   : > { %v1004_v43 = vsel %vm993_vm8, nan, %v1003_v15 }
 0x1e4   : > { %v1008_v57 = vmax.f32 %v1004_v43, 0.0 }
 0x1e6   : > { %v1012_v36 = vadd.f32 %v1008_v57, %v335_v42 }
 0x1e8   : > { %v1016_v44 = vmul.f32 0.5, %v1012_v36 }
 0x1ea   : > { %1020 = vst [vmem:[%s1809_s15 + $0x18] sm:$0xff] %v1016_v44 }
 0x1eb   : > { %1313 = shalt.err (!%p1310_p8)
}
 0x1ec   : > { %s1364_s13 = smov 128   ;;  %s1365_s14 = smov 8  }
 0x1ed   : > { %1198 = dma.vmem_to_hbm [thread:$0]  (%p1434_p5), %s1035_s22, 512, %s1037_s26, %s1022_s30, %s1364_s13, %s1364_s13, %s1365_s14  }
 0x1ee PF: > { %p1210_p9 = scmp.ge.s32.totalorder %s1352_s21, 2  ;;  %s1051_s15 = sand.u32 1, %s1340_s18  }
 0x1ef   : > { %s1052_s16 = scalar_lea.sflag [#allocation4], %s1051_s15 }
 0x1f0   : > { %p1205_p10 = pnand %p1210_p9, %p1438_p6 }
 0x1f2   : > { %p1206_p11 = pneg %p1205_p10 }
 0x1f4   : > { %1335 = dma.done.wait (%p1206_p11), %s1052_s16, 512  }
 0x1f5   : > { %1337 = vsyncadd (%p1206_p11), %s1052_s16, 4294966784  ;;  %p16_p12 = scmp.ge.s32.totalorder %s1421_s24, 4   ;;  %s1980_s18 = smov %s1344_s19 }
 0x1f6   : > { %s1981_s19 = smov %s1348_s20  ;;  %s1982_s20 = smov %s1432_s27 }
 0x1f7   : > { %s1983_s21 = smov %s1421_s24  ;;  %18 = sbr.rel (!%p16_p12) target bundleno = 4 (0x4), region = 80 }
 0x1fc   :  { %1058 = vsyncpa [#allocation3], 1 }
 0x1fd   :  { %1060 = vsyncpa [#allocation3 + $0x1], 1 }
 0x1fe   :  { %1061 = vsyncpa [#allocation4], 1 }
 0x1ff   :  { %1063 = vsyncpa [#allocation4 + $0x1], 1 }

</bundles_post_ra>
